<compile_context>
chip_gen: v7x
topology: tpu7x:2x2x1
jax: 0.10.0
libtpu: 0.0.40
codegen_flags: <defaults>
</compile_context>

<pallas_src>
import functools

import jax
import jax.numpy as jnp
from jax.experimental import pallas as pl
from jax.experimental.pallas import tpu as pltpu

LANE = 128          # TPU lane width: every feature dim padded to a multiple of this
ROW_TILE = 16       # bf16 packs 16 rows per vreg -> keep row tiles 16-aligned
NEG_BIG = -1e30     # bias for padded logit columns -> exp() underflows to 0


def _round_up(n, m):
    return ((n + m - 1) // m) * m


def _cdiv(a, b):
    return (a + b - 1) // b


def mlp_logsoftmax_kernel(x_ref, w1_ref, b1_ref, w2_ref, b2_ref, w3_ref, b3_ref,
                          o_ref):
    """fc1 -> relu -> fc2 -> relu -> fc3 -> log_softmax(axis=-1), fused.

    x arrives as raw f32 (no wrapper pad/cast); cast to bf16 here so all MXU
    operands are half-width with f32 accumulation.  All intermediates stay in
    vregs/VMEM (no HBM round-trips between layers).  The output tile is
    128-lane dense; padded logit columns were given a -1e30 bias outside the
    kernel so they never perturb max / logsumexp.
    """
    x = x_ref[...].astype(jnp.bfloat16)                            # (TB, IN) bf16

    h1 = jnp.dot(x, w1_ref[...], preferred_element_type=jnp.float32) + b1_ref[...]
    h1 = jnp.maximum(h1, 0.0).astype(jnp.bfloat16)

    h2 = jnp.dot(h1, w2_ref[...], preferred_element_type=jnp.float32) + b2_ref[...]
    h2 = jnp.maximum(h2, 0.0).astype(jnp.bfloat16)

    logits = jnp.dot(h2, w3_ref[...], preferred_element_type=jnp.float32) + b3_ref[...]

    # Numerically stable log_softmax over the last (lane) dim.
    m = jnp.max(logits, axis=-1, keepdims=True)
    shifted = logits - m
    lse = jnp.log(jnp.sum(jnp.exp(shifted), axis=-1, keepdims=True))
    o_ref[...] = (shifted - lse).astype(o_ref.dtype)


@functools.partial(jax.jit, static_argnames=("out_size", "tb"))
def network_forward(x, params, *, out_size, tb=256):
    """x: (B, input_size) f32.  Returns (B, out_size) f32 log-probabilities."""
    w1, b1, w2, b2, w3, b3 = params            # weights bf16, feature dims padded
    B, in_size = x.shape
    assert w1.shape[0] == in_size, "w1 input dim must match x feature dim"
    out_p = w3.shape[1]

    # Row tile: <= tb, 16-aligned (bf16 sublane packing).  Re-balance so the
    # padded grid (grid * tb_eff) doesn't overshoot B by a whole tile.
    tb_eff = min(tb, _round_up(B, ROW_TILE))
    n_steps = _cdiv(B, tb_eff)
    tb_eff = _round_up(_cdiv(B, n_steps), ROW_TILE)
    grid = _cdiv(B, tb_eff)

    const = lambda i: (0, 0)                    # weights/biases: VMEM-resident

    out = pl.pallas_call(
        mlp_logsoftmax_kernel,
        out_shape=jax.ShapeDtypeStruct((B, out_p), jnp.float32),
        grid=(grid,),
        in_specs=[
            # x: tiled over rows, full (unpadded) feature dim; f32 straight
            # from HBM, cast to bf16 inside the kernel.
            pl.BlockSpec((tb_eff, in_size), lambda i: (i, 0)),
            pl.BlockSpec(w1.shape, const),
            pl.BlockSpec(b1.shape, const),
            pl.BlockSpec(w2.shape, const),
            pl.BlockSpec(b2.shape, const),
            pl.BlockSpec(w3.shape, const),
            pl.BlockSpec(b3.shape, const),
        ],
        out_specs=pl.BlockSpec((tb_eff, out_p), lambda i: (i, 0)),
        compiler_params=pltpu.CompilerParams(
            dimension_semantics=("parallel",),   # shard batch over TCs on v7x
            vmem_limit_bytes=32 * 1024 * 1024,   # footprint ~2 MB; fits every gen
        ),
    )(x, w1, b1, w2, b2, w3, b3)

    return out[:, :out_size]


def init_params(key, input_size, hidden1, hidden2, output_size):
    """nn.Linear-style uniform(-1/sqrt(fan_in), +bound) init, stored as (in, out)."""
    ks = jax.random.split(key, 6)

    def lin(kw, kb, fan_in, fan_out):
        bound = 1.0 / jnp.sqrt(fan_in)
        w = jax.random.uniform(kw, (fan_in, fan_out), jnp.float32, -bound, bound)
        b = jax.random.uniform(kb, (1, fan_out), jnp.float32, -bound, bound)
        return w, b

    w1, b1 = lin(ks[0], ks[1], input_size, hidden1)
    w2, b2 = lin(ks[2], ks[3], hidden1, hidden2)
    w3, b3 = lin(ks[4], ks[5], hidden2, output_size)
    return (w1, b1, w2, b2, w3, b3)


def pad_params(params):
    """Pad hidden/output feature dims to multiples of 128; cast weights to bf16.

    w1's input dim is left at input_size (x is fed raw).  Zero-padding inner
    dims is exact (zero rows/cols contribute nothing and zero-bias padded
    hidden units stay at ReLU(0)=0).  Padded *output* logit columns get a
    -1e30 bias so log_softmax ignores them.
    """
    w1, b1, w2, b2, w3, b3 = params

    def pad_w(w, pad_in):
        i, o = w.shape
        ip = _round_up(i, LANE) if pad_in else i
        op = _round_up(o, LANE)
        return jnp.zeros((ip, op), jnp.bfloat16).at[:i, :o].set(
            w.astype(jnp.bfloat16))

    def pad_b(b, fill=0.0):
        o = b.shape[1]
        op = _round_up(o, LANE)
        return jnp.full((1, op), fill, jnp.float32).at[:, :o].set(b)

    return (pad_w(w1, pad_in=False), pad_b(b1),
            pad_w(w2, pad_in=True), pad_b(b2),
            pad_w(w3, pad_in=True), pad_b(b3, fill=NEG_BIG))


if __name__ == "__main__":
    # MNIST-flavored shapes, kept small.  grid=2 -> one step per TC on v7x,
    # two pipelined steps on single-TC chips.
    B, INPUT, H1, H2, OUT = 512, 784, 128, 64, 10

    key = jax.random.PRNGKey(0)
    k_x, k_p = jax.random.split(key)
    x = jax.random.normal(k_x, (B, INPUT), jnp.float32)

    params = pad_params(init_params(k_p, INPUT, H1, H2, OUT))

    out = network_forward(x, params, out_size=OUT)
    jax.block_until_ready(out)

    # Reference: identical math (same bf16 operands, f32 accumulation) in plain JAX.
    # TODO(synk): bf16 weights differ from a true f32 PyTorch Linear by ~1e-2 on
    # logits; store f32 weights in pad_params if exact f32 fidelity is required.
    w1, b1, w2, b2, w3, b3 = params
    xb = x.astype(jnp.bfloat16)
    h1 = jnp.maximum(jnp.dot(xb, w1, preferred_element_type=jnp.float32) + b1, 0.0)
    h2 = jnp.maximum(jnp.dot(h1.astype(jnp.bfloat16), w2,
                             preferred_element_type=jnp.float32) + b2, 0.0)
    logits = jnp.dot(h2.astype(jnp.bfloat16), w3,
                     preferred_element_type=jnp.float32) + b3
    ref = jax.nn.log_softmax(logits, axis=-1)[:, :OUT]

    assert out.shape == (B, OUT)
    assert jnp.allclose(out, ref, atol=2e-3, rtol=2e-3), \
        float(jnp.max(jnp.abs(out - ref)))

    print("KERNEL_OK")
</pallas_src>

<mosaic_0001>
module attributes {stable_mosaic.version = 11 : i64} {
  func.func @mlp_logsoftmax_kernel(%arg0: i32, %arg1: memref<256x784xf32, #tpu.memory_space<vmem>>, %arg2: memref<784x128xbf16, #tpu.memory_space<vmem>>, %arg3: memref<1x128xf32, #tpu.memory_space<vmem>>, %arg4: memref<128x128xbf16, #tpu.memory_space<vmem>>, %arg5: memref<1x128xf32, #tpu.memory_space<vmem>>, %arg6: memref<128x128xbf16, #tpu.memory_space<vmem>>, %arg7: memref<1x128xf32, #tpu.memory_space<vmem>>, %arg8: memref<256x128xf32, #tpu.memory_space<vmem>>) attributes {dimension_semantics = [#tpu.dimension_semantics<parallel>], iteration_bounds = array<i64: 2>, scalar_prefetch = 0 : i64, scratch_operands = 0 : i64, tpu.core_type = #tpu.core_type<tc>, window_params = [{transform_indices = @transform_0, window_bounds = array<i64: 256, 784>}, {pipeline_mode = #tpu.pipeline_mode<synchronous>, transform_indices = @transform_1, window_bounds = array<i64: 784, 128>}, {pipeline_mode = #tpu.pipeline_mode<synchronous>, transform_indices = @transform_2, window_bounds = array<i64: 1, 128>}, {pipeline_mode = #tpu.pipeline_mode<synchronous>, transform_indices = @transform_3, window_bounds = array<i64: 128, 128>}, {pipeline_mode = #tpu.pipeline_mode<synchronous>, transform_indices = @transform_4, window_bounds = array<i64: 1, 128>}, {pipeline_mode = #tpu.pipeline_mode<synchronous>, transform_indices = @transform_5, window_bounds = array<i64: 128, 128>}, {pipeline_mode = #tpu.pipeline_mode<synchronous>, transform_indices = @transform_6, window_bounds = array<i64: 1, 128>}, {transform_indices = @transform_7, window_bounds = array<i64: 256, 128>}]} {
    %c0 = arith.constant 0 : index
    %c0_0 = arith.constant 0 : index
    %0 = vector.load %arg1[%c0, %c0_0] : memref<256x784xf32, #tpu.memory_space<vmem>>, vector<256x784xf32>
    %1 = arith.truncf %0 : vector<256x784xf32> to vector<256x784xbf16>
    %c0_1 = arith.constant 0 : index
    %c0_2 = arith.constant 0 : index
    %2 = vector.load %arg2[%c0_1, %c0_2] : memref<784x128xbf16, #tpu.memory_space<vmem>>, vector<784x128xbf16>
    %cst = arith.constant dense<0.000000e+00> : vector<256x128xf32>
    %3 = tpu.matmul %1, %2, %cst {dimension_numbers = #tpu.dot_dimension_numbers<[1], [0], [0], [1], [0, 0, 1, 1], [], []>} : vector<256x784xbf16>, vector<784x128xbf16>, vector<256x128xf32> -> vector<256x128xf32>
    %c0_3 = arith.constant 0 : index
    %c0_4 = arith.constant 0 : index
    %4 = vector.load %arg3[%c0_3, %c0_4] : memref<1x128xf32, #tpu.memory_space<vmem>>, vector<1x128xf32>
    %5 = vector.broadcast %4 : vector<1x128xf32> to vector<256x128xf32>
    %6 = arith.addf %3, %5 : vector<256x128xf32>
    %cst_5 = arith.constant 0.000000e+00 : f32
    %7 = vector.broadcast %cst_5 : f32 to vector<256x128xf32>
    %8 = arith.maximumf %6, %7 : vector<256x128xf32>
    %9 = arith.truncf %8 : vector<256x128xf32> to vector<256x128xbf16>
    %c0_6 = arith.constant 0 : index
    %c0_7 = arith.constant 0 : index
    %10 = vector.load %arg4[%c0_6, %c0_7] : memref<128x128xbf16, #tpu.memory_space<vmem>>, vector<128x128xbf16>
    %cst_8 = arith.constant dense<0.000000e+00> : vector<256x128xf32>
    %11 = tpu.matmul %9, %10, %cst_8 {dimension_numbers = #tpu.dot_dimension_numbers<[1], [0], [0], [1], [0, 0, 1, 1], [], []>} : vector<256x128xbf16>, vector<128x128xbf16>, vector<256x128xf32> -> vector<256x128xf32>
    %c0_9 = arith.constant 0 : index
    %c0_10 = arith.constant 0 : index
    %12 = vector.load %arg5[%c0_9, %c0_10] : memref<1x128xf32, #tpu.memory_space<vmem>>, vector<1x128xf32>
    %13 = vector.broadcast %12 : vector<1x128xf32> to vector<256x128xf32>
    %14 = arith.addf %11, %13 : vector<256x128xf32>
    %cst_11 = arith.constant 0.000000e+00 : f32
    %15 = vector.broadcast %cst_11 : f32 to vector<256x128xf32>
    %16 = arith.maximumf %14, %15 : vector<256x128xf32>
    %17 = arith.truncf %16 : vector<256x128xf32> to vector<256x128xbf16>
    %c0_12 = arith.constant 0 : index
    %c0_13 = arith.constant 0 : index
    %18 = vector.load %arg6[%c0_12, %c0_13] : memref<128x128xbf16, #tpu.memory_space<vmem>>, vector<128x128xbf16>
    %cst_14 = arith.constant dense<0.000000e+00> : vector<256x128xf32>
    %19 = tpu.matmul %17, %18, %cst_14 {dimension_numbers = #tpu.dot_dimension_numbers<[1], [0], [0], [1], [0, 0, 1, 1], [], []>} : vector<256x128xbf16>, vector<128x128xbf16>, vector<256x128xf32> -> vector<256x128xf32>
    %c0_15 = arith.constant 0 : index
    %c0_16 = arith.constant 0 : index
    %20 = vector.load %arg7[%c0_15, %c0_16] : memref<1x128xf32, #tpu.memory_space<vmem>>, vector<1x128xf32>
    %21 = vector.broadcast %20 : vector<1x128xf32> to vector<256x128xf32>
    %22 = arith.addf %19, %21 : vector<256x128xf32>
    %cst_17 = arith.constant dense<0xFF800000> : vector<256xf32>
    %23 = vector.multi_reduction <maximumf>, %22, %cst_17 [1] : vector<256x128xf32> to vector<256xf32>
    %24 = vector.shape_cast %23 : vector<256xf32> to vector<256x1xf32>
    %25 = vector.broadcast %24 : vector<256x1xf32> to vector<256x128xf32>
    %26 = arith.subf %22, %25 : vector<256x128xf32>
    %27 = math.exp %26 : vector<256x128xf32>
    %cst_18 = arith.constant dense<0.000000e+00> : vector<256xf32>
    %28 = vector.multi_reduction <add>, %27, %cst_18 [1] : vector<256x128xf32> to vector<256xf32>
    %29 = vector.shape_cast %28 : vector<256xf32> to vector<256x1xf32>
    %30 = math.log %29 : vector<256x1xf32>
    %31 = vector.broadcast %30 : vector<256x1xf32> to vector<256x128xf32>
    %32 = arith.subf %26, %31 : vector<256x128xf32>
    %c0_19 = arith.constant 0 : index
    %c0_20 = arith.constant 0 : index
    %33 = vector.load %arg8[%c0_19, %c0_20] : memref<256x128xf32, #tpu.memory_space<vmem>>, vector<256x128xf32>
    tpu.vector_store %arg8[%c0_19, %c0_20], %32 {strides = array<i32>} : memref<256x128xf32, #tpu.memory_space<vmem>>, vector<256x128xf32>,
    return
  }
  func.func @transform_0(%arg0: i32) -> (i32, i32) {
    %c0_i32 = arith.constant 0 : i32
    %c0_i32_0 = arith.constant 0 : i32
    return %arg0, %c0_i32 : i32, i32
  }
  func.func @transform_1(%arg0: i32) -> (i32, i32) {
    %c0_i32 = arith.constant 0 : i32
    %c0_i32_0 = arith.constant 0 : i32
    %c0_i32_1 = arith.constant 0 : i32
    return %c0_i32, %c0_i32_0 : i32, i32
  }
  func.func @transform_2(%arg0: i32) -> (i32, i32) {
    %c0_i32 = arith.constant 0 : i32
    %c0_i32_0 = arith.constant 0 : i32
    %c0_i32_1 = arith.constant 0 : i32
    return %c0_i32, %c0_i32_0 : i32, i32
  }
  func.func @transform_3(%arg0: i32) -> (i32, i32) {
    %c0_i32 = arith.constant 0 : i32
    %c0_i32_0 = arith.constant 0 : i32
    %c0_i32_1 = arith.constant 0 : i32
    return %c0_i32, %c0_i32_0 : i32, i32
  }
  func.func @transform_4(%arg0: i32) -> (i32, i32) {
    %c0_i32 = arith.constant 0 : i32
    %c0_i32_0 = arith.constant 0 : i32
    %c0_i32_1 = arith.constant 0 : i32
    return %c0_i32, %c0_i32_0 : i32, i32
  }
  func.func @transform_5(%arg0: i32) -> (i32, i32) {
    %c0_i32 = arith.constant 0 : i32
    %c0_i32_0 = arith.constant 0 : i32
    %c0_i32_1 = arith.constant 0 : i32
    return %c0_i32, %c0_i32_0 : i32, i32
  }
  func.func @transform_6(%arg0: i32) -> (i32, i32) {
    %c0_i32 = arith.constant 0 : i32
    %c0_i32_0 = arith.constant 0 : i32
    %c0_i32_1 = arith.constant 0 : i32
    return %c0_i32, %c0_i32_0 : i32, i32
  }
  func.func @transform_7(%arg0: i32) -> (i32, i32) {
    %c0_i32 = arith.constant 0 : i32
    %c0_i32_0 = arith.constant 0 : i32
    return %arg0, %c0_i32 : i32, i32
  }
}

</mosaic_0001>

<bundles_post_ra>
// kernel: network_forward.1
= control target key start
LH: loop header
LB: loop body
LE: loop exit
PB: predicated region body
PF: predicated region fallthrough
CT: control target
= control target key end

     0   :  { %s3574_s24 = smov 0   ;;  %s4670_s0 = inlined_call_operand.vmem [shape: f32[512,784], index: 0, kind: input, shape index: {}]   ;;  %s4671_s1 = inlined_call_operand.vmem [shape: bf16[784,128], index: 1, kind: input, shape index: {}]   ;;  %s4672_s2 = inlined_call_operand.vmem [shape: f32[1,128], index: 2, kind: input, shape index: {}]   ;;  %s4673_s3 = inlined_call_operand.vmem [shape: bf16[128,128], index: 3, kind: input, shape index: {}]   ;;  %s4674_s4 = inlined_call_operand.vmem [shape: f32[1,128], index: 4, kind: input, shape index: {}]   ;;  %s4675_s5 = inlined_call_operand.vmem [shape: bf16[128,128], index: 5, kind: input, shape index: {}]   ;;  %s4676_s6 = inlined_call_operand.vmem [shape: f32[1,128], index: 6, kind: input, shape index: {}]   ;;  %s4677_s7 = inlined_call_operand.vmem [shape: f32[512,128], index: 7, kind: output, shape index: {}]  }
   0x1 LB: > { %s2682_s25 = sadd.s32 4294967295, %s3532_s24   ;;  %p2686_p0 = scmp.ge.s32.totalorder %s3532_s24, 1  ;;  %s3532_s24 = sphi %s3574_s24, %s17_s24  }
   0x2   : > { %p239_p1 = scmp.lt.s32.totalorder %s3532_s24, 3 }
   0x4   : > { %p240_p2 = pnand %p2686_p0, %p239_p1 }
   0x5   : > { %v3333_v0 = vld [vmem:[%s4671_s1 + $0x40] sm:$0xff] (!%p240_p2)   ;;  %s2687_s28 = sshll.u32 (!%p240_p2), %s2682_s25, 5  ;;  %v3335_v2 = vld [vmem:[%s4671_s1 + $0x48] sm:$0xff] (!%p240_p2)   ;;  %v3337_v4 = vld [vmem:[%s4671_s1 + $0x50] sm:$0xff] (!%p240_p2)   ;;  %vm1021_vm0 = vcmask (!%p240_p2), 130048  }
   0x6   : > { %243 = sbr.rel (%p240_p2) target bundleno = 1237 (0x4d5), region = 48  ;;  %v3334_v1 = vld [vmem:[%s4671_s1] sm:$0xff] (!%p240_p2)   ;;  %p273_p3 = scmp.lt.s32.totalorder (!%p240_p2), %s2687_s28, 63  ;;  %2777 = vmatprep.subr.bf16.mxu0 (!%p240_p2), %v3333_v0  ;;  %3308 = vmatprep.subr.bf16.mxu1 (!%p240_p2), %v3333_v0  ;;  %v3336_v3 = vld [vmem:[%s4671_s1 + $0x8] sm:$0xff] (!%p240_p2)   ;;  %v3338_v5 = vld [vmem:[%s4671_s1 + $0x10] sm:$0xff] (!%p240_p2)  }
   0x7   : > { %2778 = vmatpush3.bf16.msra.mxu0 (!%p240_p2), %v3334_v1  ;;  %3316 = vmatpush3.bf16.msra.mxu1 (!%p240_p2), %v3334_v1  ;;  %v3339_v6 = vld [vmem:[%s4671_s1 + $0x58] sm:$0xff] (!%p240_p2)   ;;  %v3341_v8 = vld [vmem:[%s4671_s1 + $0x60] sm:$0xff] (!%p240_p2)   ;;  %v3343_v10 = vld [vmem:[%s4671_s1 + $0x68] sm:$0xff] (!%p240_p2)  }
   0x8   : > { %2779 = vmatprep.subr.bf16.mxu0 (!%p240_p2), %v3335_v2  ;;  %3309 = vmatprep.subr.bf16.mxu1 (!%p240_p2), %v3335_v2  ;;  %v3340_v7 = vld [vmem:[%s4671_s1 + $0x18] sm:$0xff] (!%p240_p2)   ;;  %v3342_v9 = vld [vmem:[%s4671_s1 + $0x20] sm:$0xff] (!%p240_p2)   ;;  %v3344_v17 = vld [vmem:[%s4671_s1 + $0x28] sm:$0xff] (!%p240_p2)  }
   0x9   : > { %v3345_v18 = vld [vmem:[%s4671_s1 + $0x70] sm:$0xff] (!%p240_p2)   ;;  %v3347_v20 = vld [vmem:[%s4671_s1 + $0x78] sm:$0xff] (!%p240_p2)   ;;  %v3349_v26 = vld [vmem:[%s4671_s1 + $0xc0] sm:$0xff] (!%p240_p2)  }
   0xa   : > { %v3346_v19 = vld [vmem:[%s4671_s1 + $0x30] sm:$0xff] (!%p240_p2)   ;;  %v3348_v21 = vld [vmem:[%s4671_s1 + $0x38] sm:$0xff] (!%p240_p2)   ;;  %v3350_v27 = vld [vmem:[%s4671_s1 + $0x140] sm:$0xff] (!%p240_p2)  }
   0xb   : > { %2780 = vmatpush3.bf16.msra.mxu0 (!%p240_p2), %v3336_v3  ;;  %3317 = vmatpush3.bf16.msra.mxu1 (!%p240_p2), %v3336_v3  ;;  %v3351_v30 = vld [vmem:[%s4671_s1 + $0x80] sm:$0xff] (!%p240_p2)   ;;  %v3353_v36 = vld [vmem:[%s4671_s1 + $0xc8] sm:$0xff] (!%p240_p2)   ;;  %v3355_v45 = vld [vmem:[%s4671_s1 + $0xd0] sm:$0xff] (!%p240_p2)  }
   0xc   : > { %2781 = vmatprep.subr.bf16.mxu0 (!%p240_p2), %v3337_v4  ;;  %3310 = vmatprep.subr.bf16.mxu1 (!%p240_p2), %v3337_v4  ;;  %v3352_v35 = vld [vmem:[%s4671_s1 + $0x100] sm:$0xff] (!%p240_p2)   ;;  %v3354_v38 = vld [vmem:[%s4671_s1 + $0x88] sm:$0xff] (!%p240_p2)   ;;  %v3356_v53 = vld [vmem:[%s4671_s1 + $0x90] sm:$0xff] (!%p240_p2)  }
   0xd   : > { %s4679_s28 = smov (!%p273_p3, %s2687_s28), 63  ;;  %v3358_v42 = vld [vmem:[%s4671_s1 + $0x148] sm:$0xff]   ;;  %v3357_v55 = vld [vmem:[%s4671_s1 + $0xd8] sm:$0xff]   ;;  %v3361_v62 = vld [vmem:[%s4671_s1 + $0xe0] sm:$0xff]  }
   0xe   : > { %s3324_s18 = smul.u32 56, %s4679_s28  ;;  %v3360_v46 = vld [vmem:[%s4671_s1 + $0x108] sm:$0xff]   ;;  %v3359_v57 = vld [vmem:[%s4671_s1 + $0x98] sm:$0xff]   ;;  %v3366_v2 = vld [vmem:[%s4671_s1 + $0x150] sm:$0xff]   ;;  %s2690_s21 = sshll.u32 %s4679_s28, 3 }
   0xf   : > { %2782 = vmatpush3.bf16.msra.mxu0 %v3338_v5  ;;  %3318 = vmatpush3.bf16.msra.mxu1 %v3338_v5  ;;  %s4601_s25 = scalar_lea.vmem %s4677_s7, %s2690_s21 }
  0x10   : > { %2783 = vmatprep.subr.bf16.mxu0 %v3339_v6  ;;  %3311 = vmatprep.subr.bf16.mxu1 %v3339_v6  ;;  %s3615_s26 = scalar_lea.vmem %s4670_s0, %s3324_s18  ;;  %v3368_v6 = vld [vmem:[%s4671_s1 + $0x110] sm:$0xff]  }
  0x11   : > { %v287_v11 = vld [vmem:[%s3615_s26 + $0x8] sm:$0xff]  ;;  %v294_v12 = vld [vmem:[%s3615_s26 + $0x40] sm:$0xff]  ;;  %v293_v23 = vld [vmem:[%s3615_s26 + $0x38] sm:$0xff] }
  0x12   : > { %v455_v13 = vld [vmem:[%s3615_s26 + $0x548] sm:$0xff]  ;;  %v511_v14 = vpack.c.bf16 %v294_v12, %v287_v11  ;;  %v462_v15 = vld [vmem:[%s3615_s26 + $0x580] sm:$0xff]  ;;  %v461_v25 = vld [vmem:[%s3615_s26 + $0x578] sm:$0xff] }
  0x13   : > { %2784 = vmatpush3.bf16.msra.mxu0 %v3340_v7  ;;  %3319 = vmatpush3.bf16.msra.mxu1 %v3340_v7  ;;  %v595_v16 = vpack.c.bf16 %v462_v15, %v455_v13  ;;  %v286_v22 = vld [vmem:[%s3615_s26] sm:$0xff]  ;;  %v301_v28 = vld [vmem:[%s3615_s26 + $0x78] sm:$0xff]  ;;  %v308_v29 = vld [vmem:[%s3615_s26 + $0xb0] sm:$0xff] }
  0x14   : > { %2785 = vmatprep.subr.bf16.mxu0 %v3341_v8  ;;  %3312 = vmatprep.subr.bf16.mxu1 %v3341_v8  ;;  %v454_v24 = vld [vmem:[%s3615_s26 + $0x540] sm:$0xff]  ;;  %v469_v31 = vld [vmem:[%s3615_s26 + $0x5b8] sm:$0xff]  ;;  %v510_v32 = vpack.c.bf16 %v293_v23, %v286_v22  ;;  %v476_v34 = vld [vmem:[%s3615_s26 + $0x5f0] sm:$0xff]  ;;  %v518_v37 = vpack.c.bf16 %v308_v29, %v301_v28 }
  0x15   : > { %1102 = vmatprep.mubr.bf16.mxu0 %v511_v14  ;;  %1198 = vmatprep.mubr.bf16.mxu1 %v595_v16  ;;  %v594_v33 = vpack.c.bf16 %v461_v25, %v454_v24  ;;  %v602_v39 = vpack.c.bf16 %v476_v34, %v469_v31  ;;  %v300_v40 = vld [vmem:[%s3615_s26 + $0x70] sm:$0xff]  ;;  %v307_v41 = vld [vmem:[%s3615_s26 + $0xa8] sm:$0xff]  ;;  %v322_v48 = vld [vmem:[%s3615_s26 + $0x120] sm:$0xff] }
  0x16   : > { %v468_v43 = vld [vmem:[%s3615_s26 + $0x5b0] sm:$0xff]  ;;  %v475_v44 = vld [vmem:[%s3615_s26 + $0x5e8] sm:$0xff]  ;;  %v490_v50 = vld [vmem:[%s3615_s26 + $0x660] sm:$0xff]  ;;  %v517_v51 = vpack.c.bf16 %v307_v41, %v300_v40 }
  0x17   : > { %2786 = vmatpush3.bf16.msra.mxu0 %v3342_v9  ;;  %3320 = vmatpush3.bf16.msra.mxu1 %v3342_v9  ;;  %v315_v47 = vld [vmem:[%s3615_s26 + $0xe8] sm:$0xff]  ;;  %v601_v52 = vpack.c.bf16 %v475_v44, %v468_v43  ;;  %v314_v58 = vld [vmem:[%s3615_s26 + $0xe0] sm:$0xff]  ;;  %v321_v59 = vld [vmem:[%s3615_s26 + $0x118] sm:$0xff] }
  0x18   : > { %2787 = vmatprep.subr.bf16.mxu0 %v3343_v10  ;;  %3313 = vmatprep.subr.bf16.mxu1 %v3343_v10  ;;  %v483_v49 = vld [vmem:[%s3615_s26 + $0x628] sm:$0xff]  ;;  %v525_v54 = vpack.c.bf16 %v322_v48, %v315_v47  ;;  %v482_v60 = vld [vmem:[%s3615_s26 + $0x620] sm:$0xff]  ;;  %v489_v61 = vld [vmem:[%s3615_s26 + $0x658] sm:$0xff]  ;;  %v524_v4 = vpack.c.bf16 %v321_v59, %v314_v58 }
  0x19   : > { %v609_v56 = vpack.c.bf16 %v490_v50, %v483_v49  ;;  %v329_v63 = vld [vmem:[%s3615_s26 + $0x158] sm:$0xff]  ;;  %v336_v0 = vld [vmem:[%s3615_s26 + $0x190] sm:$0xff]  ;;  %v608_v5 = vpack.c.bf16 %v489_v61, %v482_v60  ;;  %v3362_v7 = vld [vmem:[%s4671_s1 + $0xa0] sm:$0xff]  }
  0x1a   : > { %v497_v1 = vld [vmem:[%s3615_s26 + $0x698] sm:$0xff]  ;;  %v504_v3 = vld [vmem:[%s3615_s26 + $0x6d0] sm:$0xff]  ;;  %v532_v8 = vpack.c.bf16 %v336_v0, %v329_v63  ;;  %v3363_v9 = vld [vmem:[%s4671_s1 + $0xe8] sm:$0xff]  }
  0x1b   : > { %2788 = vmatpush3.bf16.msra.mxu0 %v3344_v17  ;;  %3321 = vmatpush3.bf16.msra.mxu1 %v3344_v17  ;;  %v616_v10 = vpack.c.bf16 %v504_v3, %v497_v1  ;;  %v3364_v11 = vld [vmem:[%s4671_s1 + $0xa8] sm:$0xff]   ;;  %v328_v12 = vld [vmem:[%s3615_s26 + $0x150] sm:$0xff]  ;;  %v3373_v24 = vld [vmem:[%s4671_s1 + $0x118] sm:$0xff]  }
  0x1c   : > { %2789 = vmatprep.subr.bf16.mxu0 %v3345_v18  ;;  %3314 = vmatprep.subr.bf16.mxu1 %v3345_v18  ;;  %v335_v13 = vld [vmem:[%s3615_s26 + $0x188] sm:$0xff]  ;;  %v496_v14 = vld [vmem:[%s3615_s26 + $0x690] sm:$0xff]  ;;  %v350_v18 = vld [vmem:[%s3615_s26 + $0x200] sm:$0xff] }
  0x1d   : > { %v503_v15 = vld [vmem:[%s3615_s26 + $0x6c8] sm:$0xff]  ;;  %v3365_v16 = vld [vmem:[%s4671_s1 + $0xf0] sm:$0xff]   ;;  %v531_v22 = vpack.c.bf16 %v335_v13, %v328_v12  ;;  %v3370_v29 = vld [vmem:[%s4671_s1 + $0xb8] sm:$0xff]  }
  0x1e   : > { %v343_v17 = vld [vmem:[%s3615_s26 + $0x1c8] sm:$0xff]  ;;  %v615_v23 = vpack.c.bf16 %v503_v15, %v496_v14  ;;  %v3367_v25 = vld [vmem:[%s4671_s1 + $0xb0] sm:$0xff]   ;;  %v349_v31 = vld [vmem:[%s3615_s26 + $0x1f8] sm:$0xff] }
  0x1f   : > { %2790 = vmatpush3.bf16.msra.mxu0 %v3346_v19  ;;  %3322 = vmatpush3.bf16.msra.mxu1 %v3346_v19  ;;  %v289_v19 = vld [vmem:[%s3615_s26 + $0x18] sm:$0xff]  ;;  %v3371_v34 = vld [vmem:[%s4671_s1 + $0x180] sm:$0xff]   ;;  %v363_v47 = vld [vmem:[%s3615_s26 + $0x268] sm:$0xff] }
  0x20   : > { %2791 = vmatprep.subr.bf16.mxu0 %v3347_v20  ;;  %3315 = vmatprep.subr.bf16.mxu1 %v3347_v20  ;;  %v296_v20 = vld [vmem:[%s3615_s26 + $0x50] sm:$0xff]  ;;  %v3375_v40 = vld [vmem:[%s4671_s1 + $0x120] sm:$0xff]   ;;  %v3377_v48 = vld [vmem:[%s4671_s1 + $0x128] sm:$0xff]  }
  0x21   : > { %v513_v28 = vpack.c.bf16 %v296_v20, %v289_v19  ;;  %v302_v49 = vld [vmem:[%s3615_s26 + $0x80] sm:$0xff]  ;;  %v309_v50 = vld [vmem:[%s3615_s26 + $0xb8] sm:$0xff]  ;;  %v3378_v59 = vld [vmem:[%s4671_s1 + $0x170] sm:$0xff]  }
  0x22   : > { %v370_v60 = vld [vmem:[%s3615_s26 + $0x2a0] sm:$0xff]  ;;  %v3379_v61 = vld [vmem:[%s4671_s1 + $0x130] sm:$0xff]   ;;  %v323_v0 = vld [vmem:[%s3615_s26 + $0x128] sm:$0xff] }
  0x23   : > { %2792 = vmatpush3.bf16.msra.mxu0 %v3348_v21  ;;  %3323 = vmatpush3.bf16.msra.mxu1 %v3348_v21  ;;  %v3372_v21 = vld [vmem:[%s4671_s1 + $0x158] sm:$0xff]   ;;  %v316_v63 = vld [vmem:[%s3615_s26 + $0xf0] sm:$0xff]  ;;  %v331_v3 = vld [vmem:[%s3615_s26 + $0x168] sm:$0xff] }
  0x24   : > { %2889 = vmatprep.subr.bf16.mxu1 %v3349_v26  ;;  %3001 = vmatprep.subr.bf16.mxu0 %v3350_v27  ;;  %v539_v26 = vpack.c.bf16 %v350_v18, %v343_v17  ;;  %v3369_v27 = vld [vmem:[%s4671_s1 + $0xf8] sm:$0xff]   ;;  %v391_v12 = vld [vmem:[%s3615_s26 + $0x348] sm:$0xff]  ;;  %v330_v13 = vld [vmem:[%s3615_s26 + $0x160] sm:$0xff] }
  0x25   : > { %v385_v1 = vld [vmem:[%s3615_s26 + $0x318] sm:$0xff]  ;;  %v399_v15 = vld [vmem:[%s3615_s26 + $0x388] sm:$0xff]  ;;  %v352_v18 = vld [vmem:[%s3615_s26 + $0x210] sm:$0xff] }
  0x26   : > { %1103 = vmatmul.mubr.bf16.vlgmr.msra.gmra.mrb[0].mxu0 %v510_v32  ;;  %1199 = vmatmul.mubr.bf16.vlgmr.msra.gmra.mrb[0].mxu1 %v594_v33  ;;  %v288_v32 = vld [vmem:[%s3615_s26 + $0x10] sm:$0xff]  ;;  %v295_v33 = vld [vmem:[%s3615_s26 + $0x48] sm:$0xff]  ;;  %v337_v14 = vld [vmem:[%s3615_s26 + $0x198] sm:$0xff] }
  0x27   : > { %2890 = vmatpush3.bf16.msra.mxu1 %v3351_v30  ;;  %3002 = vmatpush3.bf16.msra.mxu0 %v3352_v35  ;;  %v342_v30 = vld [vmem:[%s3615_s26 + $0x1c0] sm:$0xff]  ;;  %v357_v35 = vld [vmem:[%s3615_s26 + $0x238] sm:$0xff]  ;;  %v533_v20 = vpack.c.bf16 %v337_v14, %v330_v13  ;;  %v312_v14 = vld [vmem:[%s3615_s26 + $0xd0] sm:$0xff] }
  0x28   : > { %2891 = vmatprep.subr.bf16.mxu1 %v3353_v36  ;;  %1110 = vmatprep.mubr.bf16.mxu0 %v518_v37  ;;  %v364_v36 = vld [vmem:[%s3615_s26 + $0x270] sm:$0xff]  ;;  %v303_v37 = vld [vmem:[%s3615_s26 + $0x88] sm:$0xff]  ;;  %v538_v41 = vpack.c.bf16 %v349_v31, %v342_v30  ;;  %v345_v17 = vld [vmem:[%s3615_s26 + $0x1d8] sm:$0xff] }
  0x29   : > { %1206 = vmatprep.mubr.bf16.mxu1 %v602_v39  ;;  %3003 = vmatprep.subr.bf16.mxu0 %v3358_v42  ;;  %v310_v39 = vld [vmem:[%s3615_s26 + $0xc0] sm:$0xff]  ;;  %v512_v42 = vpack.c.bf16 %v295_v33, %v288_v32  ;;  %v546_v43 = vpack.c.bf16 %v364_v36, %v357_v35  ;;  %v412_v35 = vld [vmem:[%s3615_s26 + $0x3f0] sm:$0xff]  ;;  %v419_v36 = vld [vmem:[%s3615_s26 + $0x428] sm:$0xff] }
  0x2a   : > { %v520_v44 = vpack.c.bf16 %v310_v39, %v303_v37  ;;  %v366_v30 = vld [vmem:[%s3615_s26 + $0x280] sm:$0xff]  ;;  %v427_v39 = vld [vmem:[%s3615_s26 + $0x468] sm:$0xff]  ;;  %v305_v13 = vld [vmem:[%s3615_s26 + $0x98] sm:$0xff] }
  0x2b   : > { %2892 = vmatpush3.bf16.msra.mxu1 %v3354_v38  ;;  %3004 = vmatpush3.bf16.msra.mxu0 %v3360_v46  ;;  %v3374_v38 = vld [vmem:[%s4671_s1 + $0x160] sm:$0xff]   ;;  %v356_v46 = vld [vmem:[%s3615_s26 + $0x230] sm:$0xff] }
  0x2c   : > { %2893 = vmatprep.subr.bf16.mxu1 %v3355_v45  ;;  %3005 = vmatprep.subr.bf16.mxu0 %v3366_v2  ;;  %v3376_v45 = vld [vmem:[%s4671_s1 + $0x168] sm:$0xff]   ;;  %v392_v2 = vld [vmem:[%s3615_s26 + $0x350] sm:$0xff]  ;;  %v358_v37 = vld [vmem:[%s3615_s26 + $0x240] sm:$0xff] }
  0x2e   : > { %1111 = vmatmul.mubr.bf16.gmra.mrb[4].mxu0 %v517_v51  ;;  %1207 = vmatmul.mubr.bf16.gmra.mrb[4].mxu1 %v601_v52  ;;  %v371_v51 = vld [vmem:[%s3615_s26 + $0x2a8] sm:$0xff]  ;;  %v378_v52 = vld [vmem:[%s3615_s26 + $0x2e0] sm:$0xff] }
  0x2f   : > { %2894 = vmatpush3.bf16.msra.mxu1 %v3356_v53  ;;  %1118 = vmatprep.mubr.bf16.mxu0 %v525_v54  ;;  %v317_v53 = vld [vmem:[%s3615_s26 + $0xf8] sm:$0xff]  ;;  %v324_v54 = vld [vmem:[%s3615_s26 + $0x130] sm:$0xff] }
  0x30   : > { %2895 = vmatprep.subr.bf16.mxu1 %v3357_v55  ;;  %1214 = vmatprep.mubr.bf16.mxu1 %v609_v56  ;;  %v545_v55 = vpack.c.bf16 %v363_v47, %v356_v46  ;;  %v519_v56 = vpack.c.bf16 %v309_v50, %v302_v49  ;;  %v527_v58 = vpack.c.bf16 %v324_v54, %v317_v53  ;;  %v426_v47 = vld [vmem:[%s3615_s26 + $0x460] sm:$0xff]  ;;  %v372_v49 = vld [vmem:[%s3615_s26 + $0x2b0] sm:$0xff]  ;;  %v379_v50 = vld [vmem:[%s3615_s26 + $0x2e8] sm:$0xff] }
  0x31   : > { %3006 = vmatpush3.bf16.msra.mxu0 %v3368_v6  ;;  %v387_v53 = vld [vmem:[%s3615_s26 + $0x328] sm:$0xff]  ;;  %v394_v54 = vld [vmem:[%s3615_s26 + $0x360] sm:$0xff] }
  0x32   : > { %3007 = vmatprep.subr.bf16.mxu0 %v3372_v21 }
  0x33   : > { %2896 = vmatpush3.bf16.msra.mxu1 %v3359_v57  ;;  %v553_v57 = vpack.c.bf16 %v378_v52, %v371_v51  ;;  %v441_v51 = vld [vmem:[%s3615_s26 + $0x4d8] sm:$0xff]  ;;  %v448_v52 = vld [vmem:[%s3615_s26 + $0x510] sm:$0xff] }
  0x34   : > { %2897 = vmatprep.subr.bf16.mxu1 %v3361_v62  ;;  %v377_v62 = vld [vmem:[%s3615_s26 + $0x2d8] sm:$0xff] }
  0x35   : > { %3008 = vmatpush3.bf16.msra.mxu0 %v3373_v24  ;;  %v552_v6 = vpack.c.bf16 %v377_v62, %v370_v60  ;;  %v405_v24 = vld [vmem:[%s3615_s26 + $0x3b8] sm:$0xff]  ;;  %v447_v60 = vld [vmem:[%s3615_s26 + $0x508] sm:$0xff] }
  0x36   : > { %1119 = vmatmul.mubr.bf16.gmra.mrb[8].mxu0 %v524_v4  ;;  %1215 = vmatmul.mubr.bf16.gmra.mrb[8].mxu1 %v608_v5  ;;  %v338_v4 = vld [vmem:[%s3615_s26 + $0x1a0] sm:$0xff]  ;;  %v3380_v5 = vld [vmem:[%s4671_s1 + $0x178] sm:$0xff]  }
  0x37   : > { %2898 = vmatpush3.bf16.msra.mxu1 %v3362_v7  ;;  %1126 = vmatprep.mubr.bf16.mxu0 %v532_v8  ;;  %v526_v7 = vpack.c.bf16 %v323_v0, %v316_v63  ;;  %v3381_v8 = vld [vmem:[%s4671_s1 + $0x138] sm:$0xff]   ;;  %v408_v0 = vld [vmem:[%s3615_s26 + $0x3d0] sm:$0xff] }
  0x38   : > { %2899 = vmatprep.subr.bf16.mxu1 %v3363_v9  ;;  %1222 = vmatprep.mubr.bf16.mxu1 %v616_v10  ;;  %v560_v9 = vpack.c.bf16 %v392_v2, %v385_v1  ;;  %v534_v10 = vpack.c.bf16 %v338_v4, %v331_v3  ;;  %v393_v62 = vld [vmem:[%s3615_s26 + $0x358] sm:$0xff]  ;;  %v291_v1 = vld [vmem:[%s3615_s26 + $0x28] sm:$0xff]  ;;  %v298_v2 = vld [vmem:[%s3615_s26 + $0x60] sm:$0xff] }
  0x39   : > { %3009 = vmatprep.subr.bf16.mxu0 %v3374_v38  ;;  %v365_v38 = vld [vmem:[%s3615_s26 + $0x278] sm:$0xff] }
  0x3a   : > { %3010 = vmatpush3.bf16.msra.mxu0 %v3375_v40  ;;  %v434_v40 = vld [vmem:[%s3615_s26 + $0x4a0] sm:$0xff]  ;;  %v401_v63 = vld [vmem:[%s3615_s26 + $0x398] sm:$0xff] }
  0x3b   : > { %2900 = vmatpush3.bf16.msra.mxu1 %v3364_v11  ;;  %3011 = vmatprep.subr.bf16.mxu0 %v3376_v45  ;;  %v384_v11 = vld [vmem:[%s3615_s26 + $0x310] sm:$0xff]  ;;  %v581_v45 = vpack.c.bf16 %v434_v40, %v427_v39 }
  0x3c   : > { %2901 = vmatprep.subr.bf16.mxu1 %v3365_v16  ;;  %v406_v16 = vld [vmem:[%s3615_s26 + $0x3c0] sm:$0xff]  ;;  %v559_v19 = vpack.c.bf16 %v391_v12, %v384_v11  ;;  %v415_v11 = vld [vmem:[%s3615_s26 + $0x408] sm:$0xff] }
  0x3d   : > { %v567_v21 = vpack.c.bf16 %v406_v16, %v399_v15  ;;  %v422_v12 = vld [vmem:[%s3615_s26 + $0x440] sm:$0xff] }
  0x3e   : > { %1127 = vmatmul.mubr.bf16.gmra.mrb[12].mxu0 %v531_v22  ;;  %1223 = vmatmul.mubr.bf16.gmra.mrb[12].mxu1 %v615_v23  ;;  %v541_v22 = vpack.c.bf16 %v352_v18, %v345_v17  ;;  %v398_v23 = vld [vmem:[%s3615_s26 + $0x380] sm:$0xff]  ;;  %v576_v17 = vpack.c.bf16 %v422_v12, %v415_v11  ;;  %v522_v18 = vpack.c.bf16 %v312_v14, %v305_v13 }
  0x3f   : > { %2902 = vmatpush3.bf16.msra.mxu1 %v3367_v25  ;;  %1134 = vmatprep.mubr.bf16.mxu0 %v539_v26  ;;  %v344_v25 = vld [vmem:[%s3615_s26 + $0x1d0] sm:$0xff]  ;;  %v351_v26 = vld [vmem:[%s3615_s26 + $0x208] sm:$0xff]  ;;  %v566_v31 = vpack.c.bf16 %v405_v24, %v398_v23  ;;  %v429_v23 = vld [vmem:[%s3615_s26 + $0x478] sm:$0xff] }
  0x40   : > { %2903 = vmatprep.subr.bf16.mxu1 %v3369_v27  ;;  %1263 = vmatprep.mubr.bf16.mxu1 %v513_v28  ;;  %v413_v27 = vld [vmem:[%s3615_s26 + $0x3f8] sm:$0xff]  ;;  %v420_v28 = vld [vmem:[%s3615_s26 + $0x430] sm:$0xff]  ;;  %v540_v32 = vpack.c.bf16 %v351_v26, %v344_v25  ;;  %v319_v25 = vld [vmem:[%s3615_s26 + $0x108] sm:$0xff] }
  0x41   : > { %3012 = vmatpush3.bf16.msra.mxu0 %v3377_v48  ;;  %v574_v33 = vpack.c.bf16 %v420_v28, %v413_v27  ;;  %v433_v48 = vld [vmem:[%s3615_s26 + $0x498] sm:$0xff]  ;;  %v436_v24 = vld [vmem:[%s3615_s26 + $0x4b0] sm:$0xff]  ;;  %v326_v26 = vld [vmem:[%s3615_s26 + $0x140] sm:$0xff] }
  0x42   : > { %3013 = vmatprep.subr.bf16.mxu0 %v3378_v59  ;;  %v440_v59 = vld [vmem:[%s3615_s26 + $0x4d0] sm:$0xff] }
  0x43   : > { %2904 = vmatpush3.bf16.msra.mxu1 %v3370_v29  ;;  %v359_v29 = vld [vmem:[%s3615_s26 + $0x248] sm:$0xff]  ;;  %v587_v3 = vpack.c.bf16 %v447_v60, %v440_v59  ;;  %v478_v60 = vld [vmem:[%s3615_s26 + $0x600] sm:$0xff] }
  0x44   : > { %3178 = vmatprep.subr.bf16.mxu1 %v3371_v34  ;;  %v471_v59 = vld [vmem:[%s3615_s26 + $0x5c8] sm:$0xff] }
  0x45   : > { %3014 = vmatpush3.bf16.msra.mxu0 %v3379_v61  ;;  %v386_v61 = vld [vmem:[%s3615_s26 + $0x320] sm:$0xff] }
  0x46   : > { %1135 = vmatmul.mubr.bf16.gmra.mrb[16].mxu0 %v538_v41  ;;  %1264 = vmatmul.mubr.bf16.vlgmr.msra.gmra.mrb[16].mxu1 %v512_v42  ;;  %v373_v41 = vld [vmem:[%s3615_s26 + $0x2b8] sm:$0xff]  ;;  %v380_v42 = vld [vmem:[%s3615_s26 + $0x2f0] sm:$0xff]  ;;  %v561_v4 = vpack.c.bf16 %v393_v62, %v386_v61 }
  0x47   : > { %3179 = vmatpush3.bf16.msra.mxu1 %v3371_v34  ;;  %1142 = vmatprep.mubr.bf16.mxu0 %v546_v43  ;;  %v548_v34 = vpack.c.bf16 %v366_v30, %v359_v29  ;;  %v573_v43 = vpack.c.bf16 %v419_v36, %v412_v35  ;;  %v555_v46 = vpack.c.bf16 %v380_v42, %v373_v41  ;;  %v443_v35 = vld [vmem:[%s3615_s26 + $0x4e8] sm:$0xff]  ;;  %v450_v36 = vld [vmem:[%s3615_s26 + $0x520] sm:$0xff]  ;;  %v361_v61 = vld [vmem:[%s3615_s26 + $0x258] sm:$0xff] }
  0x48   : > { %1271 = vmatprep.mubr.bf16.mxu1 %v520_v44  ;;  %3015 = vmatprep.subr.bf16.mxu0 %v3380_v5  ;;  %v547_v44 = vpack.c.bf16 %v365_v38, %v358_v37  ;;  %v569_v5 = vpack.c.bf16 %v408_v0, %v401_v63  ;;  %v583_v29 = vpack.c.bf16 %v436_v24, %v429_v23  ;;  %v333_v37 = vld [vmem:[%s3615_s26 + $0x178] sm:$0xff]  ;;  %v340_v38 = vld [vmem:[%s3615_s26 + $0x1b0] sm:$0xff] }
  0x49   : > { %3016 = vmatpush3.bf16.msra.mxu0 %v3381_v8  ;;  %v407_v8 = vld [vmem:[%s3615_s26 + $0x3c8] sm:$0xff]  ;;  %v529_v30 = vpack.c.bf16 %v326_v26, %v319_v25  ;;  %v590_v41 = vpack.c.bf16 %v450_v36, %v443_v35  ;;  %v536_v42 = vpack.c.bf16 %v340_v38, %v333_v37  ;;  %v368_v62 = vld [vmem:[%s3615_s26 + $0x290] sm:$0xff] }
  0x4e   : > { %1143 = vmatmul.mubr.bf16.gmra.mrb[20].mxu0 %v545_v55  ;;  %1272 = vmatmul.mubr.bf16.gmra.mrb[20].mxu1 %v519_v56  ;;  %v580_v55 = vpack.c.bf16 %v433_v48, %v426_v47  ;;  %v554_v56 = vpack.c.bf16 %v379_v50, %v372_v49  ;;  %v457_v47 = vld [vmem:[%s3615_s26 + $0x558] sm:$0xff]  ;;  %v464_v48 = vld [vmem:[%s3615_s26 + $0x590] sm:$0xff]  ;;  %v347_v49 = vld [vmem:[%s3615_s26 + $0x1e8] sm:$0xff] }
  0x4f   : > { %1150 = vmatprep.mubr.bf16.mxu0 %v553_v57  ;;  %1279 = vmatprep.mubr.bf16.mxu1 %v527_v58  ;;  %v588_v57 = vpack.c.bf16 %v448_v52, %v441_v51  ;;  %v562_v58 = vpack.c.bf16 %v394_v54, %v387_v53  ;;  %v354_v50 = vld [vmem:[%s3615_s26 + $0x220] sm:$0xff]  ;;  %v597_v53 = vpack.c.bf16 %v464_v48, %v457_v47 }
  0x50   : > { %v543_v54 = vpack.c.bf16 %v354_v50, %v347_v49 }
  0x56   : > { %1151 = vmatmul.mubr.bf16.gmra.mrb[24].mxu0 %v552_v6  ;;  %1280 = vmatmul.mubr.bf16.gmra.mrb[24].mxu1 %v526_v7  ;;  %v515_v6 = vpack.c.bf16 %v298_v2, %v291_v1  ;;  %v400_v7 = vld [vmem:[%s3615_s26 + $0x390] sm:$0xff]  ;;  %v604_v1 = vpack.c.bf16 %v478_v60, %v471_v59  ;;  %v550_v2 = vpack.c.bf16 %v368_v62, %v361_v61 }
  0x57   : > { %1158 = vmatprep.mubr.bf16.mxu0 %v560_v9  ;;  %1287 = vmatprep.mubr.bf16.mxu1 %v534_v10  ;;  %v290_v9 = vld [vmem:[%s3615_s26 + $0x20] sm:$0xff]  ;;  %v297_v10 = vld [vmem:[%s3615_s26 + $0x58] sm:$0xff]  ;;  %v568_v15 = vpack.c.bf16 %v407_v8, %v400_v7  ;;  %v492_v8 = vld [vmem:[%s3615_s26 + $0x670] sm:$0xff] }
  0x58   : > { %v514_v16 = vpack.c.bf16 %v297_v10, %v290_v9  ;;  %v485_v7 = vld [vmem:[%s3615_s26 + $0x638] sm:$0xff]  ;;  %v375_v9 = vld [vmem:[%s3615_s26 + $0x2c8] sm:$0xff]  ;;  %v382_v10 = vld [vmem:[%s3615_s26 + $0x300] sm:$0xff] }
  0x59   : > { %v611_v13 = vpack.c.bf16 %v492_v8, %v485_v7  ;;  %v557_v14 = vpack.c.bf16 %v382_v10, %v375_v9 }
  0x5e   : > { %1159 = vmatmul.mubr.bf16.gmra.mrb[28].mxu0 %v559_v19  ;;  %1288 = vmatmul.mubr.bf16.gmra.mrb[28].mxu1 %v533_v20  ;;  %v414_v19 = vld [vmem:[%s3615_s26 + $0x400] sm:$0xff]  ;;  %v421_v20 = vld [vmem:[%s3615_s26 + $0x438] sm:$0xff] }
  0x5f   : > { %1166 = vmatprep.mubr.bf16.mxu0 %v567_v21  ;;  %1295 = vmatprep.mubr.bf16.mxu1 %v541_v22  ;;  %v304_v21 = vld [vmem:[%s3615_s26 + $0x90] sm:$0xff]  ;;  %v311_v22 = vld [vmem:[%s3615_s26 + $0xc8] sm:$0xff]  ;;  %v575_v27 = vpack.c.bf16 %v421_v20, %v414_v19  ;;  %v506_v20 = vld [vmem:[%s3615_s26 + $0x6e0] sm:$0xff] }
  0x60   : > { %v521_v28 = vpack.c.bf16 %v311_v22, %v304_v21  ;;  %v499_v19 = vld [vmem:[%s3615_s26 + $0x6a8] sm:$0xff]  ;;  %v389_v21 = vld [vmem:[%s3615_s26 + $0x338] sm:$0xff]  ;;  %v396_v22 = vld [vmem:[%s3615_s26 + $0x370] sm:$0xff] }
  0x61   : > { %v618_v25 = vpack.c.bf16 %v506_v20, %v499_v19  ;;  %v564_v26 = vpack.c.bf16 %v396_v22, %v389_v21 }
  0x66   : > { %1167 = vmatmul.mubr.bf16.gmra.mrb[32].mxu0 %v566_v31  ;;  %1296 = vmatmul.mubr.bf16.gmra.mrb[32].mxu1 %v540_v32  ;;  %v428_v31 = vld [vmem:[%s3615_s26 + $0x470] sm:$0xff]  ;;  %v435_v32 = vld [vmem:[%s3615_s26 + $0x4a8] sm:$0xff] }
  0x67   : > { %1174 = vmatprep.mubr.bf16.mxu0 %v574_v33  ;;  %1303 = vmatprep.mubr.bf16.mxu1 %v548_v34  ;;  %v318_v33 = vld [vmem:[%s3615_s26 + $0x100] sm:$0xff]  ;;  %v325_v34 = vld [vmem:[%s3615_s26 + $0x138] sm:$0xff]  ;;  %v582_v39 = vpack.c.bf16 %v435_v32, %v428_v31  ;;  %v403_v31 = vld [vmem:[%s3615_s26 + $0x3a8] sm:$0xff] }
  0x68   : > { %v528_v40 = vpack.c.bf16 %v325_v34, %v318_v33  ;;  %v410_v32 = vld [vmem:[%s3615_s26 + $0x3e0] sm:$0xff]  ;;  %v292_v33 = vld [vmem:[%s3615_s26 + $0x30] sm:$0xff]  ;;  %v299_v34 = vld [vmem:[%s3615_s26 + $0x68] sm:$0xff] }
  0x69   : > { %v571_v37 = vpack.c.bf16 %v410_v32, %v403_v31  ;;  %v516_v38 = vpack.c.bf16 %v299_v34, %v292_v33 }
  0x6e   : > { %1175 = vmatmul.mubr.bf16.gmra.mrb[36].mxu0 %v573_v43  ;;  %1304 = vmatmul.mubr.bf16.gmra.mrb[36].mxu1 %v547_v44  ;;  %v442_v43 = vld [vmem:[%s3615_s26 + $0x4e0] sm:$0xff]  ;;  %v449_v44 = vld [vmem:[%s3615_s26 + $0x518] sm:$0xff] }
  0x6f   : > { %1182 = vmatprep.mubr.bf16.mxu0 %v581_v45  ;;  %1311 = vmatprep.mubr.bf16.mxu1 %v555_v46  ;;  %v332_v45 = vld [vmem:[%s3615_s26 + $0x170] sm:$0xff]  ;;  %v339_v46 = vld [vmem:[%s3615_s26 + $0x1a8] sm:$0xff]  ;;  %v589_v51 = vpack.c.bf16 %v449_v44, %v442_v43  ;;  %v417_v43 = vld [vmem:[%s3615_s26 + $0x418] sm:$0xff] }
  0x70   : > { %v535_v52 = vpack.c.bf16 %v339_v46, %v332_v45  ;;  %v424_v44 = vld [vmem:[%s3615_s26 + $0x450] sm:$0xff]  ;;  %v327_v46 = vld [vmem:[%s3615_s26 + $0x148] sm:$0xff] }
  0x71   : > { %v320_v45 = vld [vmem:[%s3615_s26 + $0x110] sm:$0xff]  ;;  %v578_v49 = vpack.c.bf16 %v424_v44, %v417_v43  ;;  %v467_v43 = vld [vmem:[%s3615_s26 + $0x5a8] sm:$0xff] }
  0x72   : > { %v530_v50 = vpack.c.bf16 %v327_v46, %v320_v45 }
  0x76   : > { %1183 = vmatmul.mubr.bf16.gmra.mrb[40].mxu0 %v580_v55  ;;  %1312 = vmatmul.mubr.bf16.gmra.mrb[40].mxu1 %v554_v56  ;;  %v456_v55 = vld [vmem:[%s3615_s26 + $0x550] sm:$0xff]  ;;  %v463_v56 = vld [vmem:[%s3615_s26 + $0x588] sm:$0xff] }
  0x77   : > { %1190 = vmatprep.mubr.bf16.mxu0 %v588_v57  ;;  %1319 = vmatprep.mubr.bf16.mxu1 %v562_v58  ;;  %v346_v57 = vld [vmem:[%s3615_s26 + $0x1e0] sm:$0xff]  ;;  %v353_v58 = vld [vmem:[%s3615_s26 + $0x218] sm:$0xff]  ;;  %v596_v63 = vpack.c.bf16 %v463_v56, %v456_v55  ;;  %v431_v55 = vld [vmem:[%s3615_s26 + $0x488] sm:$0xff] }
  0x78   : > { %v542_v0 = vpack.c.bf16 %v353_v58, %v346_v57  ;;  %v438_v56 = vld [vmem:[%s3615_s26 + $0x4c0] sm:$0xff]  ;;  %v348_v57 = vld [vmem:[%s3615_s26 + $0x1f0] sm:$0xff]  ;;  %v355_v58 = vld [vmem:[%s3615_s26 + $0x228] sm:$0xff] }
  0x79   : > { %v585_v61 = vpack.c.bf16 %v438_v56, %v431_v55  ;;  %v544_v62 = vpack.c.bf16 %v355_v58, %v348_v57  ;;  %v488_v55 = vld [vmem:[%s3615_s26 + $0x650] sm:$0xff]  ;;  %v495_v56 = vld [vmem:[%s3615_s26 + $0x688] sm:$0xff] }
  0x7e   : > { %1191 = vmatmul.mubr.bf16.gmra.mrb[44].mxu0 %v587_v3  ;;  %1320 = vmatmul.mubr.bf16.gmra.mrb[44].mxu1 %v561_v4  ;;  %v470_v3 = vld [vmem:[%s3615_s26 + $0x5c0] sm:$0xff]  ;;  %v477_v4 = vld [vmem:[%s3615_s26 + $0x5f8] sm:$0xff] }
  0x7f   : > { %1327 = vmatprep.mubr.bf16.mxu1 %v569_v5  ;;  %1424 = vmatprep.mubr.bf16.mxu0 %v515_v6  ;;  %v360_v5 = vld [vmem:[%s3615_s26 + $0x250] sm:$0xff]  ;;  %v367_v6 = vld [vmem:[%s3615_s26 + $0x288] sm:$0xff]  ;;  %v603_v11 = vpack.c.bf16 %v477_v4, %v470_v3  ;;  %v445_v3 = vld [vmem:[%s3615_s26 + $0x4f8] sm:$0xff] }
  0x80   : > { %v549_v12 = vpack.c.bf16 %v367_v6, %v360_v5  ;;  %v452_v4 = vld [vmem:[%s3615_s26 + $0x530] sm:$0xff]  ;;  %v383_v6 = vld [vmem:[%s3615_s26 + $0x308] sm:$0xff] }
  0x81   : > { %v376_v5 = vld [vmem:[%s3615_s26 + $0x2d0] sm:$0xff]  ;;  %v592_v9 = vpack.c.bf16 %v452_v4, %v445_v3 }
  0x82   : > { %v558_v10 = vpack.c.bf16 %v383_v6, %v376_v5 }
  0x86   : > { %1328 = vmatmul.mubr.bf16.gmra.mrb[48].mxu1 %v568_v15  ;;  %1425 = vmatmul.mubr.bf16.vlgmr.msra.gmra.mrb[48].mxu0 %v514_v16  ;;  %v484_v15 = vld [vmem:[%s3615_s26 + $0x630] sm:$0xff]  ;;  %v491_v16 = vld [vmem:[%s3615_s26 + $0x668] sm:$0xff] }
  0x87   : > { %1335 = vmatprep.mubr.bf16.mxu1 %v576_v17  ;;  %1432 = vmatprep.mubr.bf16.mxu0 %v522_v18  ;;  %v374_v17 = vld [vmem:[%s3615_s26 + $0x2c0] sm:$0xff]  ;;  %v381_v18 = vld [vmem:[%s3615_s26 + $0x2f8] sm:$0xff]  ;;  %v610_v23 = vpack.c.bf16 %v491_v16, %v484_v15  ;;  %v459_v15 = vld [vmem:[%s3615_s26 + $0x568] sm:$0xff] }
  0x88   : > { %v556_v24 = vpack.c.bf16 %v381_v18, %v374_v17  ;;  %v466_v16 = vld [vmem:[%s3615_s26 + $0x5a0] sm:$0xff]  ;;  %v404_v17 = vld [vmem:[%s3615_s26 + $0x3b0] sm:$0xff]  ;;  %v411_v18 = vld [vmem:[%s3615_s26 + $0x3e8] sm:$0xff] }
  0x89   : > { %v599_v21 = vpack.c.bf16 %v466_v16, %v459_v15  ;;  %v572_v22 = vpack.c.bf16 %v411_v18, %v404_v17  ;;  %v3385_v16 = vld [vmem:[%s4673_s3 + $0x18] sm:$0xff]  }
  0x8e   : > { %1336 = vmatmul.mubr.bf16.gmra.mrb[52].mxu1 %v575_v27  ;;  %1433 = vmatmul.mubr.bf16.gmra.mrb[52].mxu0 %v521_v28  ;;  %v498_v27 = vld [vmem:[%s3615_s26 + $0x6a0] sm:$0xff]  ;;  %v505_v28 = vld [vmem:[%s3615_s26 + $0x6d8] sm:$0xff] }
  0x8f   : > { %1343 = vmatprep.mubr.bf16.mxu1 %v583_v29  ;;  %1440 = vmatprep.mubr.bf16.mxu0 %v529_v30  ;;  %v388_v29 = vld [vmem:[%s3615_s26 + $0x330] sm:$0xff]  ;;  %v395_v30 = vld [vmem:[%s3615_s26 + $0x368] sm:$0xff]  ;;  %v617_v35 = vpack.c.bf16 %v505_v28, %v498_v27  ;;  %v473_v27 = vld [vmem:[%s3615_s26 + $0x5d8] sm:$0xff] }
  0x90   : > { %v563_v36 = vpack.c.bf16 %v395_v30, %v388_v29  ;;  %v480_v28 = vld [vmem:[%s3615_s26 + $0x610] sm:$0xff]  ;;  %v439_v30 = vld [vmem:[%s3615_s26 + $0x4c8] sm:$0xff] }
  0x91   : > { %v432_v29 = vld [vmem:[%s3615_s26 + $0x490] sm:$0xff]  ;;  %v606_v33 = vpack.c.bf16 %v480_v28, %v473_v27 }
  0x92   : > { %v586_v34 = vpack.c.bf16 %v439_v30, %v432_v29  ;;  %v3386_v29 = vld [vmem:[%s4673_s3 + $0x20] sm:$0xff]  }
  0x96   : > { %1344 = vmatmul.mubr.bf16.gmra.mrb[56].mxu1 %v582_v39  ;;  %1441 = vmatmul.mubr.bf16.gmra.mrb[56].mxu0 %v528_v40  ;;  %v402_v39 = vld [vmem:[%s3615_s26 + $0x3a0] sm:$0xff]  ;;  %v409_v40 = vld [vmem:[%s3615_s26 + $0x3d8] sm:$0xff] }
  0x97   : > { %1351 = vmatprep.mubr.bf16.mxu1 %v590_v41  ;;  %1448 = vmatprep.mubr.bf16.mxu0 %v536_v42  ;;  %v306_v41 = vld [vmem:[%s3615_s26 + $0xa0] sm:$0xff]  ;;  %v313_v42 = vld [vmem:[%s3615_s26 + $0xd8] sm:$0xff]  ;;  %v570_v47 = vpack.c.bf16 %v409_v40, %v402_v39  ;;  %v487_v39 = vld [vmem:[%s3615_s26 + $0x648] sm:$0xff] }
  0x98   : > { %v523_v48 = vpack.c.bf16 %v313_v42, %v306_v41  ;;  %v3382_v40 = vld [vmem:[%s4673_s3] sm:$0xff]   ;;  %v460_v42 = vld [vmem:[%s3615_s26 + $0x570] sm:$0xff] }
  0x99   : > { %v494_v41 = vld [vmem:[%s3615_s26 + $0x680] sm:$0xff]  ;;  %3212 = vmatprep.subr.bf16.mxu1 %v3382_v40 }
  0x9a   : > { %v613_v46 = vpack.c.bf16 %v494_v41, %v487_v39 }
  0x9e   : > { %1352 = vmatmul.mubr.bf16.gmra.mrb[60].mxu1 %v589_v51  ;;  %1449 = vmatmul.mubr.bf16.gmra.mrb[60].mxu0 %v535_v52  ;;  %v416_v51 = vld [vmem:[%s3615_s26 + $0x410] sm:$0xff]  ;;  %v423_v52 = vld [vmem:[%s3615_s26 + $0x448] sm:$0xff] }
  0x9f   : > { %1359 = vmatprep.mubr.bf16.mxu1 %v597_v53  ;;  %1456 = vmatprep.mubr.bf16.mxu0 %v543_v54  ;;  %v334_v53 = vld [vmem:[%s3615_s26 + $0x180] sm:$0xff]  ;;  %v341_v54 = vld [vmem:[%s3615_s26 + $0x1b8] sm:$0xff]  ;;  %v577_v59 = vpack.c.bf16 %v423_v52, %v416_v51 }
  0xa0   : > { %v537_v60 = vpack.c.bf16 %v341_v54, %v334_v53  ;;  %v481_v51 = vld [vmem:[%s3615_s26 + $0x618] sm:$0xff]  ;;  %v3383_v53 = vld [vmem:[%s4673_s3 + $0x8] sm:$0xff]   ;;  %v508_v54 = vld [vmem:[%s3615_s26 + $0x6f0] sm:$0xff] }
  0xa1   : > { %v501_v52 = vld [vmem:[%s3615_s26 + $0x6b8] sm:$0xff] }
  0xa6   : > { %1360 = vmatmul.mubr.bf16.gmra.mrb[64].mxu1 %v596_v63  ;;  %1457 = vmatmul.mubr.bf16.gmra.mrb[64].mxu0 %v542_v0  ;;  %v430_v63 = vld [vmem:[%s3615_s26 + $0x480] sm:$0xff]  ;;  %v437_v0 = vld [vmem:[%s3615_s26 + $0x4b8] sm:$0xff] }
  0xa7   : > { %1367 = vmatprep.mubr.bf16.mxu1 %v604_v1  ;;  %1464 = vmatprep.mubr.bf16.mxu0 %v550_v2  ;;  %v362_v1 = vld [vmem:[%s3615_s26 + $0x260] sm:$0xff]  ;;  %v369_v2 = vld [vmem:[%s3615_s26 + $0x298] sm:$0xff]  ;;  %v584_v7 = vpack.c.bf16 %v437_v0, %v430_v63 }
  0xa8   : > { %v551_v8 = vpack.c.bf16 %v369_v2, %v362_v1  ;;  %v502_v63 = vld [vmem:[%s3615_s26 + $0x6c0] sm:$0xff]  ;;  %v509_v0 = vld [vmem:[%s3615_s26 + $0x6f8] sm:$0xff]  ;;  %v3384_v1 = vld [vmem:[%s4673_s3 + $0x10] sm:$0xff]  }
  0xae   : > { %1368 = vmatmul.mubr.bf16.gmra.mrb[68].mxu1 %v603_v11  ;;  %1465 = vmatmul.mubr.bf16.gmra.mrb[68].mxu0 %v549_v12  ;;  %v444_v11 = vld [vmem:[%s3615_s26 + $0x4f0] sm:$0xff]  ;;  %v451_v12 = vld [vmem:[%s3615_s26 + $0x528] sm:$0xff] }
  0xaf   : > { %1375 = vmatprep.mubr.bf16.mxu1 %v611_v13  ;;  %1472 = vmatprep.mubr.bf16.mxu0 %v557_v14  ;;  %v390_v13 = vld [vmem:[%s3615_s26 + $0x340] sm:$0xff]  ;;  %v397_v14 = vld [vmem:[%s3615_s26 + $0x378] sm:$0xff]  ;;  %v591_v19 = vpack.c.bf16 %v451_v12, %v444_v11 }
  0xb0   : > { %v565_v20 = vpack.c.bf16 %v397_v14, %v390_v13 }
  0xb6   : > { %1376 = vmatmul.mubr.bf16.gmra.mrb[72].mxu1 %v610_v23  ;;  %1473 = vmatmul.mubr.bf16.gmra.mrb[72].mxu0 %v556_v24  ;;  %v458_v23 = vld [vmem:[%s3615_s26 + $0x560] sm:$0xff]  ;;  %v465_v24 = vld [vmem:[%s3615_s26 + $0x598] sm:$0xff] }
  0xb7   : > { %1383 = vmatprep.mubr.bf16.mxu1 %v618_v25  ;;  %1480 = vmatprep.mubr.bf16.mxu0 %v564_v26  ;;  %v418_v25 = vld [vmem:[%s3615_s26 + $0x420] sm:$0xff]  ;;  %v425_v26 = vld [vmem:[%s3615_s26 + $0x458] sm:$0xff]  ;;  %v598_v31 = vpack.c.bf16 %v465_v24, %v458_v23 }
  0xb8   : > { %v579_v32 = vpack.c.bf16 %v425_v26, %v418_v25 }
  0xbe   : > { %1384 = vmatmul.mubr.bf16.gmra.mrb[76].mxu1 %v617_v35  ;;  %1481 = vmatmul.mubr.bf16.gmra.mrb[76].mxu0 %v563_v36  ;;  %v472_v35 = vld [vmem:[%s3615_s26 + $0x5d0] sm:$0xff]  ;;  %v479_v36 = vld [vmem:[%s3615_s26 + $0x608] sm:$0xff] }
  0xbf   : > { %1488 = vmatprep.mubr.bf16.mxu0 %v571_v37  ;;  %3180 = vmatprep.mubr.msk.bf16.mxu1 %vm1021_vm0, %v516_v38  ;;  %v446_v37 = vld [vmem:[%s3615_s26 + $0x500] sm:$0xff]  ;;  %v453_v38 = vld [vmem:[%s3615_s26 + $0x538] sm:$0xff]  ;;  %v605_v44 = vpack.c.bf16 %v479_v36, %v472_v35 }
  0xc0   : > { %v593_v45 = vpack.c.bf16 %v453_v38, %v446_v37 }
  0xc6   : > { %1489 = vmatmul.mubr.bf16.gmra.mrb[80].mxu0 %v570_v47  ;;  %3181 = vmatmul.mubr.msk.bf16.vlgmr.msra.gmra.mrb[80].mxu1 %vm1021_vm0, %v523_v48  ;;  %v600_v47 = vpack.c.bf16 %v467_v43, %v460_v42  ;;  %v486_v48 = vld [vmem:[%s3615_s26 + $0x640] sm:$0xff]  ;;  %v3387_v42 = vld [vmem:[%s4673_s3 + $0x28] sm:$0xff]  }
  0xc7   : > { %1496 = vmatprep.mubr.bf16.mxu0 %v578_v49  ;;  %3184 = vmatprep.mubr.msk.bf16.mxu1 %vm1021_vm0, %v530_v50  ;;  %v493_v49 = vld [vmem:[%s3615_s26 + $0x678] sm:$0xff]  ;;  %v474_v50 = vld [vmem:[%s3615_s26 + $0x5e0] sm:$0xff] }
  0xc8   : > { %3213 = vmatpush3.bf16.msra.mxu1 %v3382_v40  ;;  %v612_v57 = vpack.c.bf16 %v493_v49, %v486_v48  ;;  %v607_v58 = vpack.c.bf16 %v481_v51, %v474_v50 }
  0xc9   : > { %3214 = vmatprep.subr.bf16.mxu1 %v3383_v53 }
  0xcc   : > { %3215 = vmatpush3.bf16.msra.mxu1 %v3383_v53 }
  0xcd   : > { %3216 = vmatprep.subr.bf16.mxu1 %v3384_v1 }
  0xce   : > { %1497 = vmatmul.mubr.bf16.gmra.mrb[84].mxu0 %v577_v59  ;;  %3185 = vmatmul.mubr.msk.bf16.gmra.mrb[84].mxu1 %vm1021_vm0, %v537_v60  ;;  %v620_v59 = vpack.c.bf16 %v508_v54, %v501_v52  ;;  %v614_v60 = vpack.c.bf16 %v495_v56, %v488_v55  ;;  %v3388_v55 = vld [vmem:[%s4673_s3 + $0x30] sm:$0xff]   ;;  %v4033_v56 = vld [vmem:[%s4672_s2] ss:$0 sm:$0xff] }
  0xcf   : > { %1504 = vmatprep.mubr.bf16.mxu0 %v585_v61  ;;  %3188 = vmatprep.mubr.msk.bf16.mxu1 %vm1021_vm0, %v544_v62  ;;  %v500_v61 = vld [vmem:[%s3615_s26 + $0x6b0] sm:$0xff]  ;;  %v507_v62 = vld [vmem:[%s3615_s26 + $0x6e8] sm:$0xff] }
  0xd0   : > { %v619_v6 = vpack.c.bf16 %v507_v62, %v500_v61  ;;  %3217 = vmatpush3.bf16.msra.mxu1 %v3384_v1 }
  0xd1   : > { %3218 = vmatprep.subr.bf16.mxu1 %v3385_v16 }
  0xd4   : > { %3219 = vmatpush3.bf16.msra.mxu1 %v3385_v16 }
  0xd5   : > { %3220 = vmatprep.subr.bf16.mxu1 %v3386_v29 }
  0xd6   : > { %1505 = vmatmul.mubr.bf16.gmra.mrb[88].mxu0 %v584_v7  ;;  %3189 = vmatmul.mubr.msk.bf16.gmra.mrb[88].mxu1 %vm1021_vm0, %v551_v8  ;;  %v621_v7 = vpack.c.bf16 %v509_v0, %v502_v63 }
  0xd7   : > { %1512 = vmatprep.mubr.bf16.mxu0 %v592_v9  ;;  %3192 = vmatprep.mubr.msk.bf16.mxu1 %vm1021_vm0, %v558_v10 }
  0xd8   : > { %3221 = vmatpush3.bf16.msra.mxu1 %v3386_v29 }
  0xd9   : > { %3222 = vmatprep.subr.bf16.mxu1 %v3387_v42 }
  0xdc   : > { %3223 = vmatpush3.bf16.msra.mxu1 %v3387_v42 }
  0xdd   : > { %3224 = vmatprep.subr.bf16.mxu1 %v3388_v55 }
  0xde   : > { %1513 = vmatmul.mubr.bf16.gmra.mrb[92].mxu0 %v591_v19  ;;  %3193 = vmatmul.mubr.msk.bf16.gmra.mrb[92].mxu1 %vm1021_vm0, %v565_v20 }
  0xdf   : > { %1520 = vmatprep.mubr.bf16.mxu0 %v599_v21  ;;  %3196 = vmatprep.mubr.msk.bf16.mxu1 %vm1021_vm0, %v572_v22 }
  0xe0   : > { %3225 = vmatpush3.bf16.msra.mxu1 %v3388_v55 }
  0xe6   : > { %1521 = vmatmul.mubr.bf16.gmra.mrb[96].mxu0 %v598_v31  ;;  %3197 = vmatmul.mubr.msk.bf16.gmra.mrb[96].mxu1 %vm1021_vm0, %v579_v32 }
  0xe7   : > { %1528 = vmatprep.mubr.bf16.mxu0 %v606_v33  ;;  %3200 = vmatprep.mubr.msk.bf16.mxu1 %vm1021_vm0, %v586_v34 }
  0xee   : > { %1529 = vmatmul.mubr.bf16.gmra.mrb[100].mxu0 %v605_v44  ;;  %3201 = vmatmul.mubr.msk.bf16.gmra.mrb[100].mxu1 %vm1021_vm0, %v593_v45 }
  0xef   : > { %1536 = vmatprep.mubr.bf16.mxu0 %v613_v46  ;;  %3204 = vmatprep.mubr.msk.bf16.mxu1 %vm1021_vm0, %v600_v47 }
  0xf6   : > { %1537 = vmatmul.mubr.bf16.gmra.mrb[104].mxu0 %v612_v57  ;;  %3205 = vmatmul.mubr.msk.bf16.gmra.mrb[104].mxu1 %vm1021_vm0, %v607_v58 }
  0xf7   : > { %1544 = vmatprep.mubr.bf16.mxu0 %v620_v59  ;;  %3208 = vmatprep.mubr.msk.bf16.mxu1 %vm1021_vm0, %v614_v60 }
  0xf9   : > { %v2793_v2 = vpop.f32.mrb[0].mxu0  ;;  %v2865_v3 = vpop.f32.mrb[0].mxu1 }
  0xfa   : > { %v2794_v4 = vpop.f32.mrb[1].mxu0  ;;  %v2866_v5 = vpop.f32.mrb[1].mxu1 }
  0xfb   : > { %v3985_v8 = vadd.f32 %v2794_v4, %v2793_v2  ;;  %v3987_v9 = vadd.f32 %v2866_v5, %v2865_v3  ;;  %v2796_v10 = vpop.f32.mrb[2].mxu0  ;;  %v2868_v11 = vpop.f32.mrb[2].mxu1 }
  0xfc   : > { %v2797_v12 = vpop.f32.mrb[3].mxu0  ;;  %v2869_v13 = vpop.f32.mrb[3].mxu1 }
  0xfd   : > { %v3989_v14 = vadd.f32 %v2797_v12, %v2796_v10  ;;  %v3991_v15 = vadd.f32 %v2869_v13, %v2868_v11  ;;  %v1105_v61 = vadd.f32 %v3985_v8, %v4033_v56  ;;  %v3389_v10 = vld [vmem:[%s4673_s3 + $0x38] sm:$0xff]  }
  0xfe   : > { %1545 = vmatmul.mubr.bf16.gmra.mrb[108].mxu0 %v619_v6  ;;  %3209 = vmatmul.mubr.msk.bf16.gmra.mrb[108].mxu1 %vm1021_vm0, %v621_v7 }
  0xff   : > { %v1108_v4 = vadd.f32 %v3989_v14, %v4033_v56  ;;  %3226 = vmatprep.subr.bf16.mxu1 %v3389_v10 }
 0x100   : > { %3227 = vmatpush3.bf16.msra.mxu1 %v3389_v10 }
 0x101   : > { %v2799_v17 = vpop.f32.mrb[4].mxu0  ;;  %v2871_v18 = vpop.f32.mrb[4].mxu1 }
 0x102   : > { %v2800_v19 = vpop.f32.mrb[5].mxu0  ;;  %v2872_v20 = vpop.f32.mrb[5].mxu1 }
 0x103   : > { %v3997_v21 = vadd.f32 %v2800_v19, %v2799_v17  ;;  %v3999_v22 = vadd.f32 %v2872_v20, %v2871_v18  ;;  %v2802_v23 = vpop.f32.mrb[6].mxu0  ;;  %v2874_v24 = vpop.f32.mrb[6].mxu1 }
 0x104   : > { %v2803_v25 = vpop.f32.mrb[7].mxu0  ;;  %v2875_v26 = vpop.f32.mrb[7].mxu1 }
 0x105   : > { %v4001_v27 = vadd.f32 %v2803_v25, %v2802_v23  ;;  %v4003_v28 = vadd.f32 %v2875_v26, %v2874_v24  ;;  %v1113_v14 = vadd.f32 %v3997_v21, %v4033_v56 }
 0x107   : > { %v1116_v25 = vadd.f32 %v4001_v27, %v4033_v56 }
 0x109   : > { %v2805_v30 = vpop.f32.mrb[8].mxu0  ;;  %v2877_v31 = vpop.f32.mrb[8].mxu1 }
 0x10a   : > { %v2806_v32 = vpop.f32.mrb[9].mxu0  ;;  %v2878_v33 = vpop.f32.mrb[9].mxu1 }
 0x10b   : > { %v4008_v34 = vadd.f32 %v2806_v32, %v2805_v30  ;;  %v4010_v35 = vadd.f32 %v2878_v33, %v2877_v31  ;;  %v2808_v36 = vpop.f32.mrb[10].mxu0  ;;  %v2880_v37 = vpop.f32.mrb[10].mxu1 }
 0x10c   : > { %v2809_v38 = vpop.f32.mrb[11].mxu0  ;;  %v2881_v39 = vpop.f32.mrb[11].mxu1 }
 0x10d   : > { %v4012_v40 = vadd.f32 %v2809_v38, %v2808_v36  ;;  %v4014_v41 = vadd.f32 %v2881_v39, %v2880_v37  ;;  %v1121_v37 = vadd.f32 %v4008_v34, %v4033_v56 }
 0x111   : > { %v2811_v43 = vpop.f32.mrb[12].mxu0  ;;  %v2883_v44 = vpop.f32.mrb[12].mxu1 }
 0x112   : > { %v2812_v45 = vpop.f32.mrb[13].mxu0  ;;  %v2884_v46 = vpop.f32.mrb[13].mxu1 }
 0x113   : > { %v4019_v47 = vadd.f32 %v2812_v45, %v2811_v43  ;;  %v4021_v48 = vadd.f32 %v2884_v46, %v2883_v44  ;;  %v2814_v49 = vpop.f32.mrb[14].mxu0  ;;  %v2886_v50 = vpop.f32.mrb[14].mxu1  ;;  %v1124_v45 = vadd.f32 %v4012_v40, %v4033_v56 }
 0x114   : > { %v2815_v51 = vpop.f32.mrb[15].mxu0  ;;  %v2887_v52 = vpop.f32.mrb[15].mxu1 }
 0x115   : > { %v4023_v53 = vadd.f32 %v2815_v51, %v2814_v49  ;;  %v4025_v54 = vadd.f32 %v2887_v52, %v2886_v50 }
 0x119   : > { %v2817_v57 = vpop.f32.mrb[16].mxu0  ;;  %v2905_v58 = vpop.f32.mrb[16].mxu1 }
 0x11a   : > { %v2818_v59 = vpop.f32.mrb[17].mxu0  ;;  %v2906_v60 = vpop.f32.mrb[17].mxu1 }
 0x11b   : > { %v4037_v62 = vadd.f32 %v2818_v59, %v2817_v57  ;;  %v2907_v63 = vadd.f32 %v2906_v60, %v2905_v58  ;;  %v2820_v0 = vpop.f32.mrb[18].mxu0  ;;  %v2908_v1 = vpop.f32.mrb[18].mxu1  ;;  %v1129_v58 = vadd.f32 %v4019_v47, %v4033_v56 }
 0x11c   : > { %v2821_v2 = vpop.f32.mrb[19].mxu0  ;;  %v2909_v3 = vpop.f32.mrb[19].mxu1 }
 0x11d   : > { %v4041_v5 = vadd.f32 %v2907_v63, %v1105_v61  ;;  %v4043_v6 = vadd.f32 %v2821_v2, %v2820_v0  ;;  %v2910_v7 = vadd.f32 %v2909_v3, %v2908_v1  ;;  %v1132_v1 = vadd.f32 %v4023_v53, %v4033_v56 }
 0x11f   : > { %v4048_v8 = vadd.f32 %v2910_v7, %v1108_v4 }
 0x121   : > { %v2823_v11 = vpop.f32.mrb[20].mxu0  ;;  %v2911_v12 = vpop.f32.mrb[20].mxu1 }
 0x122   : > { %v2824_v13 = vpop.f32.mrb[21].mxu0  ;;  %v2912_v16 = vpop.f32.mrb[21].mxu1 }
 0x123   : > { %v4052_v17 = vadd.f32 %v2824_v13, %v2823_v11  ;;  %v2913_v18 = vadd.f32 %v2912_v16, %v2911_v12  ;;  %v2826_v19 = vpop.f32.mrb[22].mxu0  ;;  %v2914_v20 = vpop.f32.mrb[22].mxu1  ;;  %v1137_v13 = vadd.f32 %v4037_v62, %v4033_v56 }
 0x124   : > { %v2827_v23 = vpop.f32.mrb[23].mxu0  ;;  %v2915_v24 = vpop.f32.mrb[23].mxu1 }
 0x125   : > { %v4056_v26 = vadd.f32 %v2913_v18, %v1113_v14  ;;  %v2828_v29 = vadd.f32 %v2827_v23, %v2826_v19  ;;  %v2916_v30 = vadd.f32 %v2915_v24, %v2914_v20  ;;  %v1140_v23 = vadd.f32 %v4043_v6, %v4033_v56 }
 0x127   : > { %v4058_v31 = vadd.f32 %v2916_v30, %v1116_v25 }
 0x129   : > { %v2829_v32 = vpop.f32.mrb[24].mxu0  ;;  %v2917_v33 = vpop.f32.mrb[24].mxu1 }
 0x12a   : > { %v2830_v36 = vpop.f32.mrb[25].mxu0  ;;  %v2918_v21 = vpop.f32.mrb[25].mxu1 }
 0x12b   : > { %v4062_v38 = vadd.f32 %v2830_v36, %v2829_v32  ;;  %v2919_v39 = vadd.f32 %v2918_v21, %v2917_v33  ;;  %v2832_v42 = vpop.f32.mrb[26].mxu0  ;;  %v2920_v43 = vpop.f32.mrb[26].mxu1 }
 0x12c   : > { %v2833_v44 = vpop.f32.mrb[27].mxu0  ;;  %v2921_v27 = vpop.f32.mrb[27].mxu1 }
 0x12d   : > { %v4066_v46 = vadd.f32 %v2919_v39, %v1121_v37  ;;  %v2834_v49 = vadd.f32 %v2833_v44, %v2832_v42  ;;  %v2922_v50 = vadd.f32 %v2921_v27, %v2920_v43  ;;  %v1145_v37 = vadd.f32 %v4052_v17, %v4033_v56 }
 0x12f   : > { %v4068_v51 = vadd.f32 %v2922_v50, %v1124_v45  ;;  %v1148_v45 = vadd.f32 %v2828_v29, %v4033_v56 }
 0x131   : > { %v2835_v52 = vpop.f32.mrb[28].mxu0  ;;  %v2923_v55 = vpop.f32.mrb[28].mxu1 }
 0x132   : > { %v2836_v57 = vpop.f32.mrb[29].mxu0  ;;  %v2924_v34 = vpop.f32.mrb[29].mxu1 }
 0x133   : > { %v4072_v59 = vadd.f32 %v2836_v57, %v2835_v52  ;;  %v2925_v60 = vadd.f32 %v2924_v34, %v2923_v55  ;;  %v2838_v61 = vpop.f32.mrb[30].mxu0  ;;  %v2926_v63 = vpop.f32.mrb[30].mxu1 }
 0x134   : > { %v2839_v0 = vpop.f32.mrb[31].mxu0  ;;  %v2927_v40 = vpop.f32.mrb[31].mxu1 }
 0x135   : > { %v4076_v2 = vadd.f32 %v2925_v60, %v1129_v58  ;;  %v2840_v3 = vadd.f32 %v2839_v0, %v2838_v61  ;;  %v2928_v4 = vadd.f32 %v2927_v40, %v2926_v63  ;;  %v1153_v61 = vadd.f32 %v4062_v38, %v4033_v56 }
 0x137   : > { %v4078_v7 = vadd.f32 %v2928_v4, %v1132_v1 }
 0x139   : > { %v2841_v10 = vpop.f32.mrb[32].mxu0  ;;  %v2929_v11 = vpop.f32.mrb[32].mxu1 }
 0x13a   : > { %v2842_v12 = vpop.f32.mrb[33].mxu0  ;;  %v2930_v47 = vpop.f32.mrb[33].mxu1 }
 0x13b   : > { %v4082_v16 = vadd.f32 %v2842_v12, %v2841_v10  ;;  %v2931_v14 = vadd.f32 %v2930_v47, %v2929_v11  ;;  %v2844_v18 = vpop.f32.mrb[34].mxu0  ;;  %v2932_v19 = vpop.f32.mrb[34].mxu1  ;;  %v1156_v10 = vadd.f32 %v2834_v49, %v4033_v56 }
 0x13c   : > { %v2845_v20 = vpop.f32.mrb[35].mxu0  ;;  %v2933_v53 = vpop.f32.mrb[35].mxu1 }
 0x13d   : > { %v4086_v24 = vadd.f32 %v2931_v14, %v1137_v13  ;;  %v2846_v25 = vadd.f32 %v2845_v20, %v2844_v18  ;;  %v2934_v30 = vadd.f32 %v2933_v53, %v2932_v19  ;;  %v1161_v20 = vadd.f32 %v4072_v59, %v4033_v56 }
 0x13f   : > { %v4088_v32 = vadd.f32 %v2934_v30, %v1140_v23 }
 0x141   : > { %v2847_v33 = vpop.f32.mrb[36].mxu0  ;;  %v2935_v36 = vpop.f32.mrb[36].mxu1 }
 0x142   : > { %v2848_v21 = vpop.f32.mrb[37].mxu0  ;;  %v2936_v62 = vpop.f32.mrb[37].mxu1 }
 0x143   : > { %v4092_v39 = vadd.f32 %v2848_v21, %v2847_v33  ;;  %v2937_v42 = vadd.f32 %v2936_v62, %v2935_v36  ;;  %v2850_v43 = vpop.f32.mrb[38].mxu0  ;;  %v2938_v44 = vpop.f32.mrb[38].mxu1  ;;  %v1164_v21 = vadd.f32 %v2840_v3, %v4033_v56  ;;  %v1172_v3 = vadd.f32 %v2846_v25, %v4033_v56  ;;  %v3391_v25 = vld [vmem:[%s4675_s5 + $0x8] sm:$0xff]  }
 0x144   : > { %v2851_v27 = vpop.f32.mrb[39].mxu0  ;;  %v2939_v6 = vpop.f32.mrb[39].mxu1 }
 0x145   : > { %v4095_v50 = vadd.f32 %v2937_v42, %v1145_v37  ;;  %v4097_v52 = vadd.f32 %v2851_v27, %v2850_v43  ;;  %v2940_v55 = vadd.f32 %v2939_v6, %v2938_v44 }
 0x147   : > { %v4099_v57 = vadd.f32 %v2940_v55, %v1148_v45  ;;  %v1169_v45 = vadd.f32 %v4082_v16, %v4033_v56  ;;  %v3390_v16 = vld [vmem:[%s4675_s5] sm:$0xff]  }
 0x148   : > { %3260 = vmatprep.subr.bf16.mxu0 %v3390_v16 }
 0x149   : > { %v2853_v34 = vpop.f32.mrb[40].mxu0  ;;  %v2941_v58 = vpop.f32.mrb[40].mxu1  ;;  %3261 = vmatpush3.bf16.msra.mxu0 %v3390_v16 }
 0x14a   : > { %v2854_v60 = vpop.f32.mrb[41].mxu0  ;;  %v2942_v17 = vpop.f32.mrb[41].mxu1  ;;  %3262 = vmatprep.subr.bf16.mxu0 %v3391_v25 }
 0x14b   : > { %v4103_v63 = vadd.f32 %v2854_v60, %v2853_v34  ;;  %v2943_v0 = vadd.f32 %v2942_v17, %v2941_v58  ;;  %v2856_v40 = vpop.f32.mrb[42].mxu0  ;;  %v2944_v1 = vpop.f32.mrb[42].mxu1 }
 0x14c   : > { %v2857_v29 = vpop.f32.mrb[43].mxu0  ;;  %v2945_v4 = vpop.f32.mrb[43].mxu1 }
 0x14d   : > { %v4106_v11 = vadd.f32 %v2943_v0, %v1153_v61  ;;  %v4108_v12 = vadd.f32 %v2857_v29, %v2856_v40  ;;  %v2946_v47 = vadd.f32 %v2945_v4, %v2944_v1  ;;  %3263 = vmatpush3.bf16.msra.mxu0 %v3391_v25 }
 0x14f   : > { %v4110_v13 = vadd.f32 %v2946_v47, %v1156_v10 }
 0x151   : > { %v2859_v14 = vpop.f32.mrb[44].mxu0  ;;  %v2947_v18 = vpop.f32.mrb[44].mxu1 }
 0x152   : > { %v2860_v19 = vpop.f32.mrb[45].mxu0  ;;  %v2948_v38 = vpop.f32.mrb[45].mxu1 }
 0x153   : > { %v4114_v53 = vadd.f32 %v2860_v19, %v2859_v14  ;;  %v2949_v23 = vadd.f32 %v2948_v38, %v2947_v18  ;;  %v2862_v30 = vpop.f32.mrb[46].mxu0  ;;  %v2950_v33 = vpop.f32.mrb[46].mxu1 }
 0x154   : > { %v2863_v49 = vpop.f32.mrb[47].mxu0  ;;  %v2951_v36 = vpop.f32.mrb[47].mxu1 }
 0x155   : > { %v4117_v62 = vadd.f32 %v2949_v23, %v1161_v20  ;;  %v4119_v37 = vadd.f32 %v2863_v49, %v2862_v30  ;;  %v2952_v42 = vadd.f32 %v2951_v36, %v2950_v33  ;;  %v3392_v30 = vld [vmem:[%s4675_s5 + $0x10] sm:$0xff]   ;;  %v1180_v33 = vadd.f32 %v4097_v52, %v4033_v56  ;;  %v3393_v52 = vld [vmem:[%s4675_s5 + $0x18] sm:$0xff]  }
 0x156   : > { %3264 = vmatprep.subr.bf16.mxu0 %v3392_v30 }
 0x157   : > { %v4121_v43 = vadd.f32 %v2952_v42, %v1164_v21  ;;  %3265 = vmatpush3.bf16.msra.mxu0 %v3392_v30 }
 0x158   : > { %3266 = vmatprep.subr.bf16.mxu0 %v3393_v52 }
 0x159   : > { %v2953_v44 = vpop.f32.mrb[48].mxu1  ;;  %v3017_v27 = vpop.f32.mrb[48].mxu0 }
 0x15a   : > { %v2954_v6 = vpop.f32.mrb[49].mxu1  ;;  %v3018_v59 = vpop.f32.mrb[49].mxu0 }
 0x15b   : > { %v2955_v55 = vadd.f32 %v2954_v6, %v2953_v44  ;;  %v3019_v34 = vadd.f32 %v3018_v59, %v3017_v27  ;;  %v2956_v58 = vpop.f32.mrb[50].mxu1  ;;  %v3020_v60 = vpop.f32.mrb[50].mxu0  ;;  %3267 = vmatpush3.bf16.msra.mxu0 %v3393_v52 }
 0x15c   : > { %v2957_v17 = vpop.f32.mrb[51].mxu1  ;;  %v3021_v61 = vpop.f32.mrb[51].mxu0 }
 0x15d   : > { %v4126_v0 = vadd.f32 %v2955_v55, %v1169_v45  ;;  %v2958_v40 = vadd.f32 %v2957_v17, %v2956_v58  ;;  %v3022_v1 = vadd.f32 %v3021_v61, %v3020_v60  ;;  %v4129_v29 = vadd.f32 %v3019_v34, %v4041_v5 }
 0x15e   : > { %v1177_v5 = vadd.f32 %v4092_v39, %v4033_v56  ;;  %v1188_v61 = vadd.f32 %v4108_v12, %v4033_v56  ;;  %v3395_v12 = vld [vmem:[%s4675_s5 + $0x28] sm:$0xff]  }
 0x15f   : > { %v4131_v4 = vadd.f32 %v2958_v40, %v1172_v3  ;;  %v4134_v10 = vadd.f32 %v3022_v1, %v4048_v8 }
 0x161   : > { %v2959_v47 = vpop.f32.mrb[52].mxu1  ;;  %v3023_v14 = vpop.f32.mrb[52].mxu0 }
 0x162   : > { %v2960_v18 = vpop.f32.mrb[53].mxu1  ;;  %v3024_v19 = vpop.f32.mrb[53].mxu0 }
 0x163   : > { %v2961_v38 = vadd.f32 %v2960_v18, %v2959_v47  ;;  %v3025_v8 = vadd.f32 %v3024_v19, %v3023_v14  ;;  %v2962_v20 = vpop.f32.mrb[54].mxu1  ;;  %v3026_v23 = vpop.f32.mrb[54].mxu0 }
 0x164   : > { %v2963_v49 = vpop.f32.mrb[55].mxu1  ;;  %v3027_v36 = vpop.f32.mrb[55].mxu0 }
 0x165   : > { %v4149_v21 = vadd.f32 %v2961_v38, %v1177_v5  ;;  %v2964_v42 = vadd.f32 %v2963_v49, %v2962_v20  ;;  %v3028_v44 = vadd.f32 %v3027_v36, %v3026_v23  ;;  %v4152_v39 = vadd.f32 %v3025_v8, %v4056_v26 }
 0x166   : > { %v1185_v26 = vadd.f32 %v4103_v63, %v4033_v56  ;;  %v1196_v49 = vadd.f32 %v4119_v37, %v4033_v56  ;;  %v3397_v37 = vld [vmem:[%s4675_s5 + $0x38] sm:$0xff]  }
 0x167   : > { %v4154_v27 = vadd.f32 %v2964_v42, %v1180_v33  ;;  %v4157_v6 = vadd.f32 %v3028_v44, %v4058_v31  ;;  %v3394_v31 = vld [vmem:[%s4675_s5 + $0x20] sm:$0xff]  }
 0x168   : > { %3268 = vmatprep.subr.bf16.mxu0 %v3394_v31 }
 0x169   : > { %v2965_v59 = vpop.f32.mrb[56].mxu1  ;;  %v3029_v45 = vpop.f32.mrb[56].mxu0  ;;  %3269 = vmatpush3.bf16.msra.mxu0 %v3394_v31 }
 0x16a   : > { %v2966_v55 = vpop.f32.mrb[57].mxu1  ;;  %v3030_v34 = vpop.f32.mrb[57].mxu0  ;;  %3270 = vmatprep.subr.bf16.mxu0 %v3395_v12 }
 0x16b   : > { %v2967_v58 = vadd.f32 %v2966_v55, %v2965_v59  ;;  %v3031_v60 = vadd.f32 %v3030_v34, %v3029_v45  ;;  %v2968_v3 = vpop.f32.mrb[58].mxu1  ;;  %v3032_v17 = vpop.f32.mrb[58].mxu0 }
 0x16c   : > { %v2969_v40 = vpop.f32.mrb[59].mxu1  ;;  %v3033_v1 = vpop.f32.mrb[59].mxu0 }
 0x16d   : > { %v4169_v16 = vadd.f32 %v2967_v58, %v1185_v26  ;;  %v2970_v25 = vadd.f32 %v2969_v40, %v2968_v3  ;;  %v3034_v47 = vadd.f32 %v3033_v1, %v3032_v17  ;;  %v4172_v63 = vadd.f32 %v3031_v60, %v4066_v46  ;;  %3271 = vmatpush3.bf16.msra.mxu0 %v3395_v12 }
 0x16e   : > { %v1193_v46 = vadd.f32 %v4114_v53, %v4033_v56 }
 0x16f   : > { %v4174_v14 = vadd.f32 %v2970_v25, %v1188_v61  ;;  %v4177_v18 = vadd.f32 %v3034_v47, %v4068_v51  ;;  %v3396_v51 = vld [vmem:[%s4675_s5 + $0x30] sm:$0xff]  }
 0x170   : > { %3272 = vmatprep.subr.bf16.mxu0 %v3396_v51 }
 0x171   : > { %v2971_v19 = vpop.f32.mrb[60].mxu1  ;;  %v3035_v5 = vpop.f32.mrb[60].mxu0  ;;  %3273 = vmatpush3.bf16.msra.mxu0 %v3396_v51 }
 0x172   : > { %v2972_v38 = vpop.f32.mrb[61].mxu1  ;;  %v3036_v8 = vpop.f32.mrb[61].mxu0  ;;  %3274 = vmatprep.subr.bf16.mxu0 %v3397_v37 }
 0x173   : > { %v2973_v20 = vadd.f32 %v2972_v38, %v2971_v19  ;;  %v3037_v23 = vadd.f32 %v3036_v8, %v3035_v5  ;;  %v2974_v30 = vpop.f32.mrb[62].mxu1  ;;  %v3038_v33 = vpop.f32.mrb[62].mxu0 }
 0x174   : > { %v2975_v36 = vpop.f32.mrb[63].mxu1  ;;  %v3039_v42 = vpop.f32.mrb[63].mxu0 }
 0x175   : > { %v4189_v44 = vadd.f32 %v2973_v20, %v1193_v46  ;;  %v2976_v52 = vadd.f32 %v2975_v36, %v2974_v30  ;;  %v3040_v59 = vadd.f32 %v3039_v42, %v3038_v33  ;;  %v4192_v53 = vadd.f32 %v3037_v23, %v4076_v2  ;;  %3275 = vmatpush3.bf16.msra.mxu0 %v3397_v37 }
 0x176   : > { %v1201_v2 = vadd.f32 %v3987_v9, %v4033_v56 }
 0x177   : > { %v4194_v45 = vadd.f32 %v2976_v52, %v1196_v49  ;;  %v4197_v55 = vadd.f32 %v3040_v59, %v4078_v7  ;;  %v1204_v7 = vadd.f32 %v3991_v15, %v4033_v56  ;;  %v1209_v15 = vadd.f32 %v3999_v22, %v4033_v56 }
 0x179   : > { %v2977_v34 = vpop.f32.mrb[64].mxu1  ;;  %v3041_v26 = vpop.f32.mrb[64].mxu0 }
 0x17a   : > { %v2978_v58 = vpop.f32.mrb[65].mxu1  ;;  %v3042_v60 = vpop.f32.mrb[65].mxu0 }
 0x17b   : > { %v2979_v3 = vadd.f32 %v2978_v58, %v2977_v34  ;;  %v3043_v17 = vadd.f32 %v3042_v60, %v3041_v26  ;;  %v2980_v31 = vpop.f32.mrb[66].mxu1  ;;  %v3044_v61 = vpop.f32.mrb[66].mxu0 }
 0x17c   : > { %v2981_v40 = vpop.f32.mrb[67].mxu1  ;;  %v3045_v1 = vpop.f32.mrb[67].mxu0 }
 0x17d   : > { %v4206_v25 = vadd.f32 %v2979_v3, %v1201_v2  ;;  %v2982_v47 = vadd.f32 %v2981_v40, %v2980_v31  ;;  %v3046_v12 = vadd.f32 %v3045_v1, %v3044_v61  ;;  %v4209_v19 = vadd.f32 %v3043_v17, %v4086_v24 }
 0x17e   : > { %v1212_v24 = vadd.f32 %v4003_v28, %v4033_v56  ;;  %v1217_v28 = vadd.f32 %v4010_v35, %v4033_v56 }
 0x17f   : > { %v4211_v5 = vadd.f32 %v2982_v47, %v1204_v7  ;;  %v4214_v9 = vadd.f32 %v3046_v12, %v4088_v32 }
 0x181   : > { %v2983_v38 = vpop.f32.mrb[68].mxu1  ;;  %v3047_v8 = vpop.f32.mrb[68].mxu0 }
 0x182   : > { %v2984_v46 = vpop.f32.mrb[69].mxu1  ;;  %v3048_v20 = vpop.f32.mrb[69].mxu0 }
 0x183   : > { %v2985_v23 = vadd.f32 %v2984_v46, %v2983_v38  ;;  %v3049_v30 = vadd.f32 %v3048_v20, %v3047_v8  ;;  %v2986_v33 = vpop.f32.mrb[70].mxu1  ;;  %v3050_v51 = vpop.f32.mrb[70].mxu0 }
 0x184   : > { %v2987_v49 = vpop.f32.mrb[71].mxu1  ;;  %v3051_v36 = vpop.f32.mrb[71].mxu0 }
 0x185   : > { %v4220_v42 = vadd.f32 %v2985_v23, %v1209_v15  ;;  %v2988_v32 = vadd.f32 %v2987_v49, %v2986_v33  ;;  %v3052_v52 = vadd.f32 %v3051_v36, %v3050_v51  ;;  %v4223_v59 = vadd.f32 %v3049_v30, %v4095_v50 }
 0x186   : > { %v1220_v50 = vadd.f32 %v4014_v41, %v4033_v56  ;;  %v1225_v41 = vadd.f32 %v4021_v48, %v4033_v56 }
 0x187   : > { %v4225_v37 = vadd.f32 %v2988_v32, %v1212_v24  ;;  %v4228_v22 = vadd.f32 %v3052_v52, %v4099_v57 }
 0x189   : > { %v2989_v34 = vpop.f32.mrb[72].mxu1  ;;  %v3053_v26 = vpop.f32.mrb[72].mxu0 }
 0x18a   : > { %v2990_v58 = vpop.f32.mrb[73].mxu1  ;;  %v3054_v60 = vpop.f32.mrb[73].mxu0 }
 0x18b   : > { %v2991_v2 = vadd.f32 %v2990_v58, %v2989_v34  ;;  %v3055_v3 = vadd.f32 %v3054_v60, %v3053_v26  ;;  %v2992_v17 = vpop.f32.mrb[74].mxu1  ;;  %v3056_v31 = vpop.f32.mrb[74].mxu0 }
 0x18c   : > { %v2993_v61 = vpop.f32.mrb[75].mxu1  ;;  %v3057_v7 = vpop.f32.mrb[75].mxu0 }
 0x18d   : > { %v4234_v40 = vadd.f32 %v2991_v2, %v1217_v28  ;;  %v2994_v57 = vadd.f32 %v2993_v61, %v2992_v17  ;;  %v3058_v1 = vadd.f32 %v3057_v7, %v3056_v31  ;;  %v4237_v47 = vadd.f32 %v3055_v3, %v4106_v11 }
 0x18e   : > { %v1228_v11 = vadd.f32 %v4025_v54, %v4033_v56 }
 0x18f   : > { %v4239_v12 = vadd.f32 %v2994_v57, %v1220_v50  ;;  %v4242_v35 = vadd.f32 %v3058_v1, %v4110_v13 }
 0x191   : > { %v2995_v38 = vpop.f32.mrb[76].mxu1  ;;  %v3059_v8 = vpop.f32.mrb[76].mxu0 }
 0x192   : > { %v2996_v46 = vpop.f32.mrb[77].mxu1  ;;  %v3060_v20 = vpop.f32.mrb[77].mxu0 }
 0x193   : > { %v2997_v15 = vadd.f32 %v2996_v46, %v2995_v38  ;;  %v3061_v23 = vadd.f32 %v3060_v20, %v3059_v8  ;;  %v2998_v30 = vpop.f32.mrb[78].mxu1  ;;  %v3062_v33 = vpop.f32.mrb[78].mxu0 }
 0x194   : > { %v2999_v51 = vpop.f32.mrb[79].mxu1  ;;  %v3063_v24 = vpop.f32.mrb[79].mxu0 }
 0x195   : > { %v4248_v49 = vadd.f32 %v2997_v15, %v1225_v41  ;;  %v3000_v13 = vadd.f32 %v2999_v51, %v2998_v30  ;;  %v3064_v36 = vadd.f32 %v3063_v24, %v3062_v33  ;;  %v4251_v32 = vadd.f32 %v3061_v23, %v4117_v62 }
 0x197   : > { %v4253_v52 = vadd.f32 %v3000_v13, %v1228_v11  ;;  %v4256_v48 = vadd.f32 %v3064_v36, %v4121_v43 }
 0x199   : > { %v3065_v34 = vpop.f32.mrb[80].mxu0  ;;  %v3182_v26 = vpop.f32.mrb[80].mxu1 }
 0x19a   : > { %v1596_v58 = vadd.f32 %v3182_v26, %v4152_v39  ;;  %v3066_v60 = vpop.f32.mrb[81].mxu0  ;;  %v1587_v54 = vpop.f32.mrb[81].mxu1 }
 0x19b   : > { %v3067_v56 = vadd.f32 %v3066_v60, %v3065_v34  ;;  %v1588_v28 = vadd.f32 %v1587_v54, %v4129_v29  ;;  %v3068_v2 = vpop.f32.mrb[82].mxu0  ;;  %v3183_v3 = vpop.f32.mrb[82].mxu1 }
 0x19c   : > { %v1599_v17 = vadd.f32 %v3183_v3, %v4157_v6  ;;  %v3069_v62 = vpop.f32.mrb[83].mxu0  ;;  %v1590_v31 = vpop.f32.mrb[83].mxu1  ;;  %v1716_v7 = vmax.f32 %v1596_v58, 0.0 }
 0x19d   : > { %v3070_v50 = vadd.f32 %v3069_v62, %v3068_v2  ;;  %v1591_v61 = vadd.f32 %v1590_v31, %v4134_v10  ;;  %v4263_v43 = vadd.f32 %v3067_v56, %v4126_v0  ;;  %v1714_v39 = vmax.f32 %v1588_v28, 0.0 }
 0x19e   : > { %v1717_v57 = vmax.f32 %v1599_v17, 0.0 }
 0x19f   : > { %v1715_v1 = vmax.f32 %v1591_v61, 0.0  ;;  %v4266_v38 = vadd.f32 %v3070_v50, %v4131_v4 }
 0x1a0   : > { %v1747_v29 = vpack.c.bf16 %v1717_v57, %v1716_v7 }
 0x1a1   : > { %v1746_v8 = vpack.c.bf16 %v1715_v1, %v1714_v39  ;;  %v3071_v46 = vpop.f32.mrb[84].mxu0  ;;  %v3186_v20 = vpop.f32.mrb[84].mxu1 }
 0x1a2   : > { %v1612_v6 = vadd.f32 %v3186_v20, %v4192_v53  ;;  %v3072_v41 = vpop.f32.mrb[85].mxu0  ;;  %v1603_v15 = vpop.f32.mrb[85].mxu1 }
 0x1a3   : > { %v3073_v23 = vadd.f32 %v3072_v41, %v3071_v46  ;;  %v1604_v10 = vadd.f32 %v1603_v15, %v4172_v63  ;;  %v3074_v0 = vpop.f32.mrb[86].mxu0  ;;  %v3187_v30 = vpop.f32.mrb[86].mxu1  ;;  %3228 = vmatprep.mubr.bf16.mxu1 %v1746_v8 }
 0x1a4   : > { %v1615_v33 = vadd.f32 %v3187_v30, %v4197_v55  ;;  %v3075_v11 = vpop.f32.mrb[87].mxu0  ;;  %v1606_v51 = vpop.f32.mrb[87].mxu1  ;;  %3229 = vmatmul.mubr.bf16.vlgmr.msra.gmra.mrb[112].mxu1 %v1747_v29  ;;  %v1720_v36 = vmax.f32 %v1612_v6, 0.0 }
 0x1a5   : > { %v3076_v4 = vadd.f32 %v3075_v11, %v3074_v0  ;;  %v1607_v24 = vadd.f32 %v1606_v51, %v4177_v18  ;;  %v1499_v13 = vadd.f32 %v3073_v23, %v4149_v21  ;;  %v1718_v34 = vmax.f32 %v1604_v10, 0.0 }
 0x1a6   : > { %v1721_v53 = vmax.f32 %v1615_v33, 0.0 }
 0x1a7   : > { %v1719_v26 = vmax.f32 %v1607_v24, 0.0  ;;  %v1502_v58 = vadd.f32 %v3076_v4, %v4154_v27 }
 0x1a8   : > { %v1749_v63 = vpack.c.bf16 %v1721_v53, %v1720_v36 }
 0x1a9   : > { %v1748_v60 = vpack.c.bf16 %v1719_v26, %v1718_v34  ;;  %v3077_v54 = vpop.f32.mrb[88].mxu0  ;;  %v3190_v56 = vpop.f32.mrb[88].mxu1 }
 0x1aa   : > { %v1628_v55 = vadd.f32 %v3190_v56, %v4223_v59  ;;  %v3078_v28 = vpop.f32.mrb[89].mxu0  ;;  %v1619_v2 = vpop.f32.mrb[89].mxu1 }
 0x1ab   : > { %v3079_v3 = vadd.f32 %v3078_v28, %v3077_v54  ;;  %v1620_v17 = vadd.f32 %v1619_v2, %v4209_v19  ;;  %v3080_v18 = vpop.f32.mrb[90].mxu0  ;;  %v3191_v62 = vpop.f32.mrb[90].mxu1  ;;  %3232 = vmatprep.mubr.bf16.mxu1 %v1748_v60 }
 0x1ac   : > { %v1631_v21 = vadd.f32 %v3191_v62, %v4228_v22  ;;  %v3081_v31 = vpop.f32.mrb[91].mxu0  ;;  %v1622_v50 = vpop.f32.mrb[91].mxu1  ;;  %3233 = vmatmul.mubr.bf16.gmra.mrb[116].mxu1 %v1749_v63  ;;  %v1724_v57 = vmax.f32 %v1628_v55, 0.0 }
 0x1ad   : > { %v3082_v27 = vadd.f32 %v3081_v31, %v3080_v18  ;;  %v1623_v61 = vadd.f32 %v1622_v50, %v4214_v9  ;;  %v1507_v7 = vadd.f32 %v3079_v3, %v4169_v16  ;;  %v1722_v39 = vmax.f32 %v1620_v17, 0.0 }
 0x1ae   : > { %v1725_v59 = vmax.f32 %v1631_v21, 0.0 }
 0x1af   : > { %v1723_v1 = vmax.f32 %v1623_v61, 0.0  ;;  %v4280_v29 = vadd.f32 %v3082_v27, %v4174_v14 }
 0x1b0   : > { %v1751_v19 = vpack.c.bf16 %v1725_v59, %v1724_v57 }
 0x1b1   : > { %v1750_v8 = vpack.c.bf16 %v1723_v1, %v1722_v39  ;;  %v3083_v46 = vpop.f32.mrb[92].mxu0  ;;  %v3194_v20 = vpop.f32.mrb[92].mxu1 }
 0x1b2   : > { %v1644_v22 = vadd.f32 %v3194_v20, %v4251_v32  ;;  %v3084_v6 = vpop.f32.mrb[93].mxu0  ;;  %v1635_v41 = vpop.f32.mrb[93].mxu1 }
 0x1b3   : > { %v3085_v15 = vadd.f32 %v3084_v6, %v3083_v46  ;;  %v1636_v9 = vadd.f32 %v1635_v41, %v4237_v47  ;;  %v3086_v23 = vpop.f32.mrb[94].mxu0  ;;  %v3195_v16 = vpop.f32.mrb[94].mxu1  ;;  %3236 = vmatprep.mubr.bf16.mxu1 %v1750_v8 }
 0x1b4   : > { %v1647_v10 = vadd.f32 %v3195_v16, %v4256_v48  ;;  %v3087_v0 = vpop.f32.mrb[95].mxu0  ;;  %v1638_v30 = vpop.f32.mrb[95].mxu1  ;;  %3237 = vmatmul.mubr.bf16.gmra.mrb[120].mxu1 %v1751_v19  ;;  %v1728_v51 = vmax.f32 %v1644_v22, 0.0 }
 0x1b5   : > { %v3088_v14 = vadd.f32 %v3087_v0, %v3086_v23  ;;  %v1639_v33 = vadd.f32 %v1638_v30, %v4242_v35  ;;  %v1515_v11 = vadd.f32 %v3085_v15, %v4189_v44  ;;  %v1726_v4 = vmax.f32 %v1636_v9, 0.0 }
 0x1b6   : > { %v1729_v32 = vmax.f32 %v1647_v10, 0.0 }
 0x1b7   : > { %v1727_v24 = vmax.f32 %v1639_v33, 0.0  ;;  %v1518_v36 = vadd.f32 %v3088_v14, %v4194_v45 }
 0x1b8   : > { %v1753_v47 = vpack.c.bf16 %v1729_v32, %v1728_v51 }
 0x1b9   : > { %v1752_v53 = vpack.c.bf16 %v1727_v24, %v1726_v4  ;;  %v3089_v34 = vpop.f32.mrb[96].mxu0  ;;  %v3198_v26 = vpop.f32.mrb[96].mxu1 }
 0x1ba   : > { %v1660_v63 = vadd.f32 %v3198_v26, %v1499_v13  ;;  %v3090_v48 = vpop.f32.mrb[97].mxu0  ;;  %v1651_v60 = vpop.f32.mrb[97].mxu1 }
 0x1bb   : > { %v3091_v54 = vadd.f32 %v3090_v48, %v3089_v34  ;;  %v1652_v56 = vadd.f32 %v1651_v60, %v4263_v43  ;;  %v3092_v55 = vpop.f32.mrb[98].mxu0  ;;  %v3199_v35 = vpop.f32.mrb[98].mxu1  ;;  %3240 = vmatprep.mubr.bf16.mxu1 %v1752_v53 }
 0x1bc   : > { %v1663_v44 = vadd.f32 %v3199_v35, %v1502_v58  ;;  %v3093_v28 = vpop.f32.mrb[99].mxu0  ;;  %v1654_v2 = vpop.f32.mrb[99].mxu1  ;;  %3241 = vmatmul.mubr.bf16.gmra.mrb[124].mxu1 %v1753_v47  ;;  %v1732_v18 = vmax.f32 %v1660_v63, 0.0 }
 0x1bd   : > { %v3094_v3 = vadd.f32 %v3093_v28, %v3092_v55  ;;  %v1655_v45 = vadd.f32 %v1654_v2, %v4266_v38  ;;  %v1523_v17 = vadd.f32 %v3091_v54, %v4206_v25  ;;  %v1730_v13 = vmax.f32 %v1652_v56, 0.0 }
 0x1be   : > { %v1733_v62 = vmax.f32 %v1663_v44, 0.0 }
 0x1bf   : > { %v1731_v21 = vmax.f32 %v1655_v45, 0.0  ;;  %v1526_v31 = vadd.f32 %v3094_v3, %v4211_v5 }
 0x1c0   : > { %v1755_v50 = vpack.c.bf16 %v1733_v62, %v1732_v18 }
 0x1c1   : > { %v1754_v43 = vpack.c.bf16 %v1731_v21, %v1730_v13  ;;  %v3095_v27 = vpop.f32.mrb[100].mxu0  ;;  %v3202_v61 = vpop.f32.mrb[100].mxu1 }
 0x1c2   : > { %v1676_v57 = vadd.f32 %v3202_v61, %v1515_v11  ;;  %v3096_v58 = vpop.f32.mrb[101].mxu0  ;;  %v1667_v59 = vpop.f32.mrb[101].mxu1 }
 0x1c3   : > { %v3097_v39 = vadd.f32 %v3096_v58, %v3095_v27  ;;  %v1668_v1 = vadd.f32 %v1667_v59, %v1507_v7  ;;  %v3098_v19 = vpop.f32.mrb[102].mxu0  ;;  %v3203_v8 = vpop.f32.mrb[102].mxu1  ;;  %3244 = vmatprep.mubr.bf16.mxu1 %v1754_v43  ;;  %v4302_v59 = vld [vmem:[%s4674_s4] ss:$0 sm:$0xff] }
 0x1c4   : > { %v1679_v38 = vadd.f32 %v3203_v8, %v1518_v36  ;;  %v3099_v25 = vpop.f32.mrb[103].mxu0  ;;  %v1670_v46 = vpop.f32.mrb[103].mxu1  ;;  %3245 = vmatmul.mubr.bf16.gmra.mrb[128].mxu1 %v1755_v50  ;;  %v1736_v6 = vmax.f32 %v1676_v57, 0.0 }
 0x1c5   : > { %v3100_v20 = vadd.f32 %v3099_v25, %v3098_v19  ;;  %v1671_v22 = vadd.f32 %v1670_v46, %v4280_v29  ;;  %v1531_v5 = vadd.f32 %v3097_v39, %v4220_v42  ;;  %v1734_v15 = vmax.f32 %v1668_v1, 0.0 }
 0x1c6   : > { %v1737_v41 = vmax.f32 %v1679_v38, 0.0 }
 0x1c7   : > { %v1735_v9 = vmax.f32 %v1671_v22, 0.0  ;;  %v1534_v23 = vadd.f32 %v3100_v20, %v4225_v37 }
 0x1c8   : > { %v1757_v16 = vpack.c.bf16 %v1737_v41, %v1736_v6 }
 0x1c9   : > { %v1756_v7 = vpack.c.bf16 %v1735_v9, %v1734_v15  ;;  %v3101_v10 = vpop.f32.mrb[104].mxu0  ;;  %v3206_v0 = vpop.f32.mrb[104].mxu1 }
 0x1ca   : > { %v1692_v30 = vadd.f32 %v3206_v0, %v1531_v5  ;;  %v3102_v14 = vpop.f32.mrb[105].mxu0  ;;  %v1683_v33 = vpop.f32.mrb[105].mxu1 }
 0x1cb   : > { %v3103_v11 = vadd.f32 %v3102_v14, %v3101_v10  ;;  %v1684_v51 = vadd.f32 %v1683_v33, %v1523_v17  ;;  %v3104_v32 = vpop.f32.mrb[106].mxu0  ;;  %v3207_v4 = vpop.f32.mrb[106].mxu1  ;;  %3248 = vmatprep.mubr.bf16.mxu1 %v1756_v7 }
 0x1cc   : > { %v1695_v29 = vadd.f32 %v3207_v4, %v1534_v23  ;;  %v3105_v42 = vpop.f32.mrb[107].mxu0  ;;  %v1686_v24 = vpop.f32.mrb[107].mxu1  ;;  %3249 = vmatmul.mubr.bf16.gmra.mrb[132].mxu1 %v1757_v16  ;;  %v1740_v53 = vmax.f32 %v1692_v30, 0.0 }
 0x1cd   : > { %v3106_v36 = vadd.f32 %v3105_v42, %v3104_v32  ;;  %v1687_v47 = vadd.f32 %v1686_v24, %v1526_v31  ;;  %v1539_v37 = vadd.f32 %v3103_v11, %v4234_v40  ;;  %v1738_v26 = vmax.f32 %v1684_v51, 0.0 }
 0x1ce   : > { %v1741_v34 = vmax.f32 %v1695_v29, 0.0 }
 0x1cf   : > { %v1739_v63 = vmax.f32 %v1687_v47, 0.0  ;;  %v1542_v48 = vadd.f32 %v3106_v36, %v4239_v12 }
 0x1d0   : > { %v1759_v60 = vpack.c.bf16 %v1741_v34, %v1740_v53 }
 0x1d1   : > { %v1758_v54 = vpack.c.bf16 %v1739_v63, %v1738_v26  ;;  %v3107_v56 = vpop.f32.mrb[108].mxu0  ;;  %v3210_v55 = vpop.f32.mrb[108].mxu1 }
 0x1d2   : > { %v3108_v35 = vpop.f32.mrb[109].mxu0  ;;  %v1699_v44 = vpop.f32.mrb[109].mxu1 }
 0x1d3   : > { %v3109_v28 = vadd.f32 %v3108_v35, %v3107_v56  ;;  %v1700_v2 = vadd.f32 %v1699_v44, %v1539_v37  ;;  %v3110_v3 = vpop.f32.mrb[110].mxu0  ;;  %v3211_v45 = vpop.f32.mrb[110].mxu1  ;;  %3252 = vmatprep.mubr.bf16.mxu1 %v1758_v54 }
 0x1d4   : > { %v3111_v17 = vpop.f32.mrb[111].mxu0  ;;  %v1702_v18 = vpop.f32.mrb[111].mxu1  ;;  %3253 = vmatmul.mubr.bf16.gmra.mrb[136].mxu1 %v1759_v60 }
 0x1d5   : > { %v1547_v40 = vadd.f32 %v3109_v28, %v4248_v49  ;;  %v3112_v62 = vadd.f32 %v3111_v17, %v3110_v3  ;;  %v1703_v13 = vadd.f32 %v1702_v18, %v1542_v48  ;;  %v1742_v12 = vmax.f32 %v1700_v2, 0.0 }
 0x1d7   : > { %v1708_v21 = vadd.f32 %v3210_v55, %v1547_v40  ;;  %v1550_v31 = vadd.f32 %v3112_v62, %v4253_v52  ;;  %v1743_v50 = vmax.f32 %v1703_v13, 0.0 }
 0x1d9   : > { %v1711_v43 = vadd.f32 %v3211_v45, %v1550_v31  ;;  %v1760_v27 = vpack.c.bf16 %v1743_v50, %v1742_v12  ;;  %v1744_v61 = vmax.f32 %v1708_v21, 0.0 }
 0x1db   : > { %v1745_v57 = vmax.f32 %v1711_v43, 0.0  ;;  %3256 = vmatprep.mubr.bf16.mxu1 %v1760_v27 }
 0x1dd   : > { %v1761_v58 = vpack.c.bf16 %v1745_v57, %v1744_v61 }
 0x1df   : > { %3257 = vmatmul.mubr.bf16.gmra.mrb[140].mxu1 %v1761_v58 }
 0x277   : > { %v3230_v49 = vpop.f32.mrb[112].mxu1 }
 0x278   : > { %v1876_v39 = vadd.f32 %v3230_v49, %v4302_v59  ;;  %v1867_v1 = vpop.f32.mrb[113].mxu1 }
 0x279   : > { %v1868_v19 = vadd.f32 %v4302_v59, %v1867_v1  ;;  %v3231_v52 = vpop.f32.mrb[114].mxu1 }
 0x27a   : > { %v1879_v8 = vadd.f32 %v3231_v52, %v4302_v59  ;;  %v1870_v38 = vpop.f32.mrb[115].mxu1  ;;  %v1996_v46 = vmax.f32 %v1876_v39, 0.0 }
 0x27b   : > { %v1871_v25 = vadd.f32 %v4302_v59, %v1870_v38  ;;  %v1994_v22 = vmax.f32 %v1868_v19, 0.0 }
 0x27c   : > { %v1997_v20 = vmax.f32 %v1879_v8, 0.0 }
 0x27d   : > { %v1995_v5 = vmax.f32 %v1871_v25, 0.0 }
 0x27e   : > { %v2027_v6 = vpack.c.bf16 %v1997_v20, %v1996_v46 }
 0x27f   : > { %v2026_v41 = vpack.c.bf16 %v1995_v5, %v1994_v22  ;;  %v3234_v15 = vpop.f32.mrb[116].mxu1 }
 0x280   : > { %v1892_v9 = vadd.f32 %v3234_v15, %v4302_v59  ;;  %v1883_v23 = vpop.f32.mrb[117].mxu1 }
 0x281   : > { %v1884_v16 = vadd.f32 %v4302_v59, %v1883_v23  ;;  %v3235_v7 = vpop.f32.mrb[118].mxu1  ;;  %3276 = vmatprep.mubr.bf16.mxu0 %v2026_v41 }
 0x282   : > { %v1895_v10 = vadd.f32 %v3235_v7, %v4302_v59  ;;  %v1886_v0 = vpop.f32.mrb[119].mxu1  ;;  %3277 = vmatmul.mubr.bf16.vlgmr.msra.gmra.mrb[112].mxu0 %v2027_v6  ;;  %v2000_v14 = vmax.f32 %v1892_v9, 0.0 }
 0x283   : > { %v1887_v30 = vadd.f32 %v4302_v59, %v1886_v0  ;;  %v1998_v11 = vmax.f32 %v1884_v16, 0.0 }
 0x284   : > { %v2001_v33 = vmax.f32 %v1895_v10, 0.0 }
 0x285   : > { %v1999_v51 = vmax.f32 %v1887_v30, 0.0 }
 0x286   : > { %v2029_v32 = vpack.c.bf16 %v2001_v33, %v2000_v14 }
 0x287   : > { %v2028_v4 = vpack.c.bf16 %v1999_v51, %v1998_v11  ;;  %v3238_v29 = vpop.f32.mrb[120].mxu1 }
 0x288   : > { %v1908_v42 = vadd.f32 %v3238_v29, %v4302_v59  ;;  %v1899_v24 = vpop.f32.mrb[121].mxu1 }
 0x289   : > { %v1900_v36 = vadd.f32 %v4302_v59, %v1899_v24  ;;  %v3239_v47 = vpop.f32.mrb[122].mxu1  ;;  %3280 = vmatprep.mubr.bf16.mxu0 %v2028_v4 }
 0x28a   : > { %v1911_v37 = vadd.f32 %v3239_v47, %v4302_v59  ;;  %v1902_v53 = vpop.f32.mrb[123].mxu1  ;;  %3281 = vmatmul.mubr.bf16.gmra.mrb[116].mxu0 %v2029_v32  ;;  %v2004_v26 = vmax.f32 %v1908_v42, 0.0 }
 0x28b   : > { %v1903_v34 = vadd.f32 %v4302_v59, %v1902_v53  ;;  %v2002_v48 = vmax.f32 %v1900_v36, 0.0 }
 0x28c   : > { %v2005_v63 = vmax.f32 %v1911_v37, 0.0 }
 0x28d   : > { %v2003_v60 = vmax.f32 %v1903_v34, 0.0 }
 0x28e   : > { %v2031_v54 = vpack.c.bf16 %v2005_v63, %v2004_v26 }
 0x28f   : > { %v2030_v56 = vpack.c.bf16 %v2003_v60, %v2002_v48  ;;  %v3242_v55 = vpop.f32.mrb[124].mxu1 }
 0x290   : > { %v1924_v35 = vadd.f32 %v3242_v55, %v4302_v59  ;;  %v1915_v44 = vpop.f32.mrb[125].mxu1 }
 0x291   : > { %v1916_v28 = vadd.f32 %v4302_v59, %v1915_v44  ;;  %v3243_v2 = vpop.f32.mrb[126].mxu1  ;;  %3284 = vmatprep.mubr.bf16.mxu0 %v2030_v56 }
 0x292   : > { %v1927_v3 = vadd.f32 %v3243_v2, %v4302_v59  ;;  %v1918_v45 = vpop.f32.mrb[127].mxu1  ;;  %3285 = vmatmul.mubr.bf16.gmra.mrb[120].mxu0 %v2031_v54  ;;  %v2008_v18 = vmax.f32 %v1924_v35, 0.0 }
 0x293   : > { %v1919_v17 = vadd.f32 %v4302_v59, %v1918_v45  ;;  %v2006_v62 = vmax.f32 %v1916_v28, 0.0 }
 0x294   : > { %v2009_v40 = vmax.f32 %v1927_v3, 0.0 }
 0x295   : > { %v2007_v13 = vmax.f32 %v1919_v17, 0.0  ;;  %v4339_v17 = vld [vmem:[%s4676_s6] ss:$0 sm:$0xff] }
 0x296   : > { %v2033_v21 = vpack.c.bf16 %v2009_v40, %v2008_v18 }
 0x297   : > { %v2032_v12 = vpack.c.bf16 %v2007_v13, %v2006_v62  ;;  %v3246_v31 = vpop.f32.mrb[128].mxu1 }
 0x298   : > { %v1940_v50 = vadd.f32 %v3246_v31, %v4302_v59  ;;  %v1931_v43 = vpop.f32.mrb[129].mxu1 }
 0x299   : > { %v1932_v27 = vadd.f32 %v4302_v59, %v1931_v43  ;;  %v3247_v61 = vpop.f32.mrb[130].mxu1  ;;  %3288 = vmatprep.mubr.bf16.mxu0 %v2032_v12 }
 0x29a   : > { %v1943_v57 = vadd.f32 %v3247_v61, %v4302_v59  ;;  %v1934_v58 = vpop.f32.mrb[131].mxu1  ;;  %3289 = vmatmul.mubr.bf16.gmra.mrb[124].mxu0 %v2033_v21  ;;  %v2012_v39 = vmax.f32 %v1940_v50, 0.0 }
 0x29b   : > { %v1935_v49 = vadd.f32 %v4302_v59, %v1934_v58  ;;  %v2010_v19 = vmax.f32 %v1932_v27, 0.0 }
 0x29c   : > { %v2013_v1 = vmax.f32 %v1943_v57, 0.0 }
 0x29d   : > { %v2011_v52 = vmax.f32 %v1935_v49, 0.0 }
 0x29e   : > { %v2035_v8 = vpack.c.bf16 %v2013_v1, %v2012_v39 }
 0x29f   : > { %v2034_v38 = vpack.c.bf16 %v2011_v52, %v2010_v19  ;;  %v3250_v25 = vpop.f32.mrb[132].mxu1 }
 0x2a0   : > { %v1956_v46 = vadd.f32 %v3250_v25, %v4302_v59  ;;  %v1947_v20 = vpop.f32.mrb[133].mxu1 }
 0x2a1   : > { %v1948_v22 = vadd.f32 %v4302_v59, %v1947_v20  ;;  %v3251_v5 = vpop.f32.mrb[134].mxu1  ;;  %3292 = vmatprep.mubr.bf16.mxu0 %v2034_v38 }
 0x2a2   : > { %v1959_v6 = vadd.f32 %v3251_v5, %v4302_v59  ;;  %v1950_v41 = vpop.f32.mrb[135].mxu1  ;;  %3293 = vmatmul.mubr.bf16.gmra.mrb[128].mxu0 %v2035_v8  ;;  %v2016_v9 = vmax.f32 %v1956_v46, 0.0 }
 0x2a3   : > { %v1951_v15 = vadd.f32 %v4302_v59, %v1950_v41  ;;  %v2014_v16 = vmax.f32 %v1948_v22, 0.0 }
 0x2a4   : > { %v2017_v23 = vmax.f32 %v1959_v6, 0.0 }
 0x2a5   : > { %v2015_v7 = vmax.f32 %v1951_v15, 0.0 }
 0x2a6   : > { %v2037_v10 = vpack.c.bf16 %v2017_v23, %v2016_v9 }
 0x2a7   : > { %v2036_v0 = vpack.c.bf16 %v2015_v7, %v2014_v16  ;;  %v3254_v30 = vpop.f32.mrb[136].mxu1 }
 0x2a8   : > { %v1972_v14 = vadd.f32 %v3254_v30, %v4302_v59  ;;  %v1963_v33 = vpop.f32.mrb[137].mxu1 }
 0x2a9   : > { %v1964_v11 = vadd.f32 %v4302_v59, %v1963_v33  ;;  %v3255_v51 = vpop.f32.mrb[138].mxu1  ;;  %3296 = vmatprep.mubr.bf16.mxu0 %v2036_v0 }
 0x2aa   : > { %v1975_v32 = vadd.f32 %v3255_v51, %v4302_v59  ;;  %v1966_v4 = vpop.f32.mrb[139].mxu1  ;;  %3297 = vmatmul.mubr.bf16.gmra.mrb[132].mxu0 %v2037_v10  ;;  %v2020_v42 = vmax.f32 %v1972_v14, 0.0 }
 0x2ab   : > { %v1967_v29 = vadd.f32 %v4302_v59, %v1966_v4  ;;  %v2018_v36 = vmax.f32 %v1964_v11, 0.0 }
 0x2ac   : > { %v2021_v24 = vmax.f32 %v1975_v32, 0.0 }
 0x2ad   : > { %v2019_v47 = vmax.f32 %v1967_v29, 0.0 }
 0x2ae   : > { %v2039_v37 = vpack.c.bf16 %v2021_v24, %v2020_v42 }
 0x2af   : > { %v2038_v53 = vpack.c.bf16 %v2019_v47, %v2018_v36 }
 0x2b1   : > { %3300 = vmatprep.mubr.bf16.mxu0 %v2038_v53 }
 0x2b2   : > { %v3258_v34 = vpop.f32.mrb[140].mxu1  ;;  %3301 = vmatmul.mubr.bf16.gmra.mrb[136].mxu0 %v2039_v37 }
 0x2b3   : > { %v1988_v26 = vadd.f32 %v3258_v34, %v4302_v59  ;;  %v1979_v63 = vpop.f32.mrb[141].mxu1 }
 0x2b4   : > { %v1980_v48 = vadd.f32 %v4302_v59, %v1979_v63  ;;  %v3259_v60 = vpop.f32.mrb[142].mxu1 }
 0x2b5   : > { %v1991_v54 = vadd.f32 %v3259_v60, %v4302_v59  ;;  %v1982_v56 = vpop.f32.mrb[143].mxu1  ;;  %v2024_v35 = vmax.f32 %v1988_v26, 0.0 }
 0x2b6   : > { %v1983_v55 = vadd.f32 %v4302_v59, %v1982_v56  ;;  %v2022_v28 = vmax.f32 %v1980_v48, 0.0 }
 0x2b7   : > { %v2025_v44 = vmax.f32 %v1991_v54, 0.0 }
 0x2b8   : > { %v2023_v2 = vmax.f32 %v1983_v55, 0.0 }
 0x2b9   : > { %v2041_v3 = vpack.c.bf16 %v2025_v44, %v2024_v35 }
 0x2ba   : > { %v2040_v45 = vpack.c.bf16 %v2023_v2, %v2022_v28 }
 0x2bc   : > { %3304 = vmatprep.mubr.bf16.mxu0 %v2040_v45 }
 0x2bd   : > { %3305 = vmatmul.mubr.bf16.gmra.mrb[140].mxu0 %v2041_v3 }
 0x355   : > { %v3278_v18 = vpop.f32.mrb[112].mxu0 }
 0x356   : > { %v4342_v40 = vadd.f32 %v3278_v18, %v4339_v17  ;;  %v2147_v62 = vpop.f32.mrb[113].mxu0 }
 0x357   : > { %v4345_v59 = vadd.f32 %v4339_v17, %v2147_v62  ;;  %v3279_v13 = vpop.f32.mrb[114].mxu0 }
 0x358   : > { %2278 = vmax.xlane.f32.xlu1 %v4342_v40  ;;  %v2150_v21 = vpop.f32.mrb[115].mxu0  ;;  %v4350_v12 = vadd.f32 %v3279_v13, %v4339_v17 }
 0x359   : > { %2274 = vmax.xlane.f32.xlu0 %v4345_v59  ;;  %v4353_v31 = vadd.f32 %v4339_v17, %v2150_v21 }
 0x35c   : > { %2280 = vmax.xlane.f32.xlu1 %v4350_v12 }
 0x35d   : > { %v3282_v50 = vpop.f32.mrb[116].mxu0  ;;  %2276 = vmax.xlane.f32.xlu0 %v4353_v31 }
 0x35e   : > { %v4358_v43 = vadd.f32 %v3282_v50, %v4339_v17  ;;  %v2163_v27 = vpop.f32.mrb[117].mxu0 }
 0x35f   : > { %v3283_v61 = vpop.f32.mrb[118].mxu0  ;;  %v4366_v49 = vadd.f32 %v4339_v17, %v2163_v27 }
 0x360   : > { %v4361_v57 = vadd.f32 %v3283_v61, %v4339_v17  ;;  %v2166_v58 = vpop.f32.mrb[119].mxu0 }
 0x361   : > { %2286 = vmax.xlane.f32.xlu0 %v4358_v43  ;;  %v4369_v39 = vadd.f32 %v4339_v17, %v2166_v58 }
 0x362   : > { %2288 = vmax.xlane.f32.xlu1 %v4361_v57 }
 0x365   : > { %v3286_v1 = vpop.f32.mrb[120].mxu0  ;;  %2282 = vmax.xlane.f32.xlu0 %v4366_v49 }
 0x366   : > { %v4373_v19 = vadd.f32 %v3286_v1, %v4339_v17  ;;  %v2179_v52 = vpop.f32.mrb[121].mxu0  ;;  %2284 = vmax.xlane.f32.xlu1 %v4369_v39 }
 0x367   : > { %v3287_v8 = vpop.f32.mrb[122].mxu0  ;;  %v4382_v46 = vadd.f32 %v4339_v17, %v2179_v52 }
 0x368   : > { %v4377_v38 = vadd.f32 %v3287_v8, %v4339_v17  ;;  %v2182_v25 = vpop.f32.mrb[123].mxu0 }
 0x369   : > { %2294 = vmax.xlane.f32.xlu0 %v4373_v19  ;;  %v4385_v20 = vadd.f32 %v4339_v17, %v2182_v25 }
 0x36a   : > { %2296 = vmax.xlane.f32.xlu1 %v4377_v38 }
 0x36d   : > { %v3290_v22 = vpop.f32.mrb[124].mxu0  ;;  %2290 = vmax.xlane.f32.xlu0 %v4382_v46 }
 0x36e   : > { %v4389_v5 = vadd.f32 %v3290_v22, %v4339_v17  ;;  %v2195_v6 = vpop.f32.mrb[125].mxu0  ;;  %2292 = vmax.xlane.f32.xlu1 %v4385_v20 }
 0x36f   : > { %v3291_v41 = vpop.f32.mrb[126].mxu0  ;;  %v4398_v23 = vadd.f32 %v4339_v17, %v2195_v6 }
 0x370   : > { %v4393_v15 = vadd.f32 %v3291_v41, %v4339_v17  ;;  %v2198_v9 = vpop.f32.mrb[127].mxu0 }
 0x371   : > { %2302 = vmax.xlane.f32.xlu0 %v4389_v5  ;;  %v4401_v16 = vadd.f32 %v4339_v17, %v2198_v9 }
 0x372   : > { %2304 = vmax.xlane.f32.xlu1 %v4393_v15 }
 0x375   : > { %v3294_v7 = vpop.f32.mrb[128].mxu0  ;;  %2298 = vmax.xlane.f32.xlu0 %v4398_v23 }
 0x376   : > { %v4405_v10 = vadd.f32 %v3294_v7, %v4339_v17  ;;  %v2211_v0 = vpop.f32.mrb[129].mxu0  ;;  %2300 = vmax.xlane.f32.xlu1 %v4401_v16 }
 0x377   : > { %v3295_v30 = vpop.f32.mrb[130].mxu0  ;;  %v4414_v11 = vadd.f32 %v4339_v17, %v2211_v0 }
 0x378   : > { %v4409_v14 = vadd.f32 %v3295_v30, %v4339_v17  ;;  %v2214_v33 = vpop.f32.mrb[131].mxu0 }
 0x379   : > { %2310 = vmax.xlane.f32.xlu0 %v4405_v10  ;;  %v4417_v51 = vadd.f32 %v4339_v17, %v2214_v33 }
 0x37a   : > { %2312 = vmax.xlane.f32.xlu1 %v4409_v14 }
 0x37d   : > { %v3298_v32 = vpop.f32.mrb[132].mxu0  ;;  %2306 = vmax.xlane.f32.xlu0 %v4414_v11 }
 0x37e   : > { %v4421_v4 = vadd.f32 %v3298_v32, %v4339_v17  ;;  %v2227_v29 = vpop.f32.mrb[133].mxu0  ;;  %2308 = vmax.xlane.f32.xlu1 %v4417_v51 }
 0x37f   : > { %v3299_v42 = vpop.f32.mrb[134].mxu0  ;;  %v4430_v47 = vadd.f32 %v4339_v17, %v2227_v29 }
 0x380   : > { %v4425_v24 = vadd.f32 %v3299_v42, %v4339_v17  ;;  %v2230_v36 = vpop.f32.mrb[135].mxu0 }
 0x381   : > { %2318 = vmax.xlane.f32.xlu0 %v4421_v4  ;;  %v4433_v37 = vadd.f32 %v4339_v17, %v2230_v36 }
 0x382   : > { %2320 = vmax.xlane.f32.xlu1 %v4425_v24 }
 0x385   : > { %v3302_v53 = vpop.f32.mrb[136].mxu0  ;;  %2314 = vmax.xlane.f32.xlu0 %v4430_v47 }
 0x386   : > { %v4437_v34 = vadd.f32 %v3302_v53, %v4339_v17  ;;  %v2243_v26 = vpop.f32.mrb[137].mxu0  ;;  %2316 = vmax.xlane.f32.xlu1 %v4433_v37 }
 0x387   : > { %v3303_v63 = vpop.f32.mrb[138].mxu0  ;;  %v4446_v54 = vadd.f32 %v4339_v17, %v2243_v26 }
 0x388   : > { %v4441_v48 = vadd.f32 %v3303_v63, %v4339_v17  ;;  %v2246_v60 = vpop.f32.mrb[139].mxu0 }
 0x389   : > { %2326 = vmax.xlane.f32.xlu0 %v4437_v34  ;;  %v4449_v56 = vadd.f32 %v4339_v17, %v2246_v60 }
 0x38a   : > { %2328 = vmax.xlane.f32.xlu1 %v4441_v48 }
 0x38d   : > { %2322 = vmax.xlane.f32.xlu0 %v4446_v54 }
 0x38e   : > { %2324 = vmax.xlane.f32.xlu1 %v4449_v56 }
 0x390   : > { %v3306_v55 = vpop.f32.mrb[140].mxu0 }
 0x391   : > { %v4454_v35 = vadd.f32 %v3306_v55, %v4339_v17  ;;  %v2259_v44 = vpop.f32.mrb[141].mxu0 }
 0x392   : > { %v4457_v28 = vadd.f32 %v4339_v17, %v2259_v44  ;;  %v3307_v2 = vpop.f32.mrb[142].mxu0 }
 0x393   : > { %v4460_v3 = vadd.f32 %v3307_v2, %v4339_v17  ;;  %v2262_v45 = vpop.f32.mrb[143].mxu0 }
 0x394   : > { %v4463_v18 = vadd.f32 %v4339_v17, %v2262_v45  ;;  %2330 = vmax.xlane.f32.xlu0 %v4457_v28 }
 0x396   : > { %2332 = vmax.xlane.f32.xlu1 %v4463_v18 }
 0x398   : > { %2334 = vmax.xlane.f32.xlu0 %v4454_v35 }
 0x39a   : > { %2336 = vmax.xlane.f32.xlu1 %v4460_v3 }
 0x3e5   : > { %v2279_v62 = vpop.xlane.xlu1 %2278 }
 0x3e6   : > { %v4470_v13 = vsub.f32 %v4342_v40, %v2279_v62  ;;  %v2275_v21 = vpop.xlane.xlu0 %2274 }
 0x3e7   : > { %v4473_v50 = vsub.f32 %v4345_v59, %v2275_v21 }
 0x3e8   : > { %v2374_v27 = vmul.f32 1.442695, %v4470_v13 }
 0x3e9   : > { %v2370_v17 = vmul.f32 1.442695, %v4473_v50  ;;  %v2281_v61 = vpop.xlane.xlu1 %2280 }
 0x3ea   : > { %3398 = vpow2.f32 %v2374_v27  ;;  %v4478_v58 = vsub.f32 %v4350_v12, %v2281_v61  ;;  %v2277_v1 = vpop.xlane.xlu0 %2276 }
 0x3eb   : > { %v4481_v52 = vsub.f32 %v4353_v31, %v2277_v1  ;;  %3400 = vpow2.f32 %v2370_v17 }
 0x3ec   : > { %v2376_v40 = vmul.f32 1.442695, %v4478_v58 }
 0x3ed   : > { %v2372_v59 = vmul.f32 1.442695, %v4481_v52 }
 0x3ee   : > { %3402 = vpow2.f32 %v2376_v40  ;;  %v2287_v8 = vpop.xlane.xlu0 %2286 }
 0x3ef   : > { %v4486_v25 = vsub.f32 %v4358_v43, %v2287_v8  ;;  %v2289_v22 = vpop.xlane.xlu1 %2288  ;;  %3404 = vpow2.f32 %v2372_v59 }
 0x3f0   : > { %v4489_v6 = vsub.f32 %v4361_v57, %v2289_v22 }
 0x3f1   : > { %v2382_v12 = vmul.f32 1.442695, %v4486_v25 }
 0x3f2   : > { %v2384_v31 = vmul.f32 1.442695, %v4489_v6  ;;  %v2283_v41 = vpop.xlane.xlu0 %2282 }
 0x3f3   : > { %3406 = vpow2.f32 %v2382_v12  ;;  %v4494_v9 = vsub.f32 %v4366_v49, %v2283_v41  ;;  %v2285_v7 = vpop.xlane.xlu1 %2284 }
 0x3f4   : > { %v3399_v0 = vpop.eup %3398  ;;  %v4497_v30 = vsub.f32 %v4369_v39, %v2285_v7  ;;  %3408 = vpow2.f32 %v2384_v31 }
 0x3f5   : > { %v2378_v43 = vmul.f32 1.442695, %v4494_v9  ;;  %2438 = vadd.xlane.f32.xlu0 %v3399_v0  ;;  %v3401_v32 = vpop.eup %3400 }
 0x3f6   : > { %v2380_v57 = vmul.f32 1.442695, %v4497_v30  ;;  %v2295_v33 = vpop.xlane.xlu0 %2294 }
 0x3f7   : > { %3410 = vpow2.f32 %v2378_v43  ;;  %v4502_v29 = vsub.f32 %v4373_v19, %v2295_v33  ;;  %v2297_v42 = vpop.xlane.xlu1 %2296 }
 0x3f8   : > { %v3403_v49 = vpop.eup %3402  ;;  %v4505_v36 = vsub.f32 %v4377_v38, %v2297_v42  ;;  %3412 = vpow2.f32 %v2380_v57 }
 0x3f9   : > { %v2390_v39 = vmul.f32 1.442695, %v4502_v29  ;;  %2440 = vadd.xlane.f32.xlu1 %v3403_v49  ;;  %2434 = vadd.xlane.f32.xlu0 %v3401_v32  ;;  %v3405_v19 = vpop.eup %3404 }
 0x3fa   : > { %v2392_v53 = vmul.f32 1.442695, %v4505_v36  ;;  %v2291_v26 = vpop.xlane.xlu0 %2290 }
 0x3fb   : > { %3414 = vpow2.f32 %v2390_v39  ;;  %v4510_v63 = vsub.f32 %v4382_v46, %v2291_v26  ;;  %v2293_v60 = vpop.xlane.xlu1 %2292 }
 0x3fc   : > { %v4513_v55 = vsub.f32 %v4385_v20, %v2293_v60  ;;  %3416 = vpow2.f32 %v2392_v53 }
 0x3fd   : > { %v3407_v44 = vpop.eup %3406  ;;  %v2386_v38 = vmul.f32 1.442695, %v4510_v63  ;;  %2436 = vadd.xlane.f32.xlu1 %v3405_v19 }
 0x3fe   : > { %v2388_v2 = vmul.f32 1.442695, %v4513_v55  ;;  %2446 = vadd.xlane.f32.xlu0 %v3407_v44  ;;  %v2303_v45 = vpop.xlane.xlu0 %2302  ;;  %v3409_v21 = vpop.eup %3408 }
 0x3ff   : > { %3418 = vpow2.f32 %v2386_v38  ;;  %v4518_v62 = vsub.f32 %v4389_v5, %v2303_v45  ;;  %v2305_v46 = vpop.xlane.xlu1 %2304 }
 0x400   : > { %v4521_v27 = vsub.f32 %v4393_v15, %v2305_v46  ;;  %3420 = vpow2.f32 %v2388_v2 }
 0x401   : > { %v3411_v20 = vpop.eup %3410  ;;  %v2398_v17 = vmul.f32 1.442695, %v4518_v62  ;;  %2448 = vadd.xlane.f32.xlu1 %v3409_v21 }
 0x402   : > { %v2400_v61 = vmul.f32 1.442695, %v4521_v27  ;;  %2442 = vadd.xlane.f32.xlu0 %v3411_v20  ;;  %v2299_v1 = vpop.xlane.xlu0 %2298  ;;  %v3413_v59 = vpop.eup %3412 }
 0x403   : > { %3422 = vpow2.f32 %v2398_v17  ;;  %v4526_v40 = vsub.f32 %v4398_v23, %v2299_v1  ;;  %v2301_v5 = vpop.xlane.xlu1 %2300 }
 0x404   : > { %v4529_v8 = vsub.f32 %v4401_v16, %v2301_v5  ;;  %3424 = vpow2.f32 %v2400_v61 }
 0x405   : > { %v3415_v15 = vpop.eup %3414  ;;  %v2394_v22 = vmul.f32 1.442695, %v4526_v40  ;;  %2444 = vadd.xlane.f32.xlu1 %v3413_v59 }
 0x406   : > { %v2396_v12 = vmul.f32 1.442695, %v4529_v8  ;;  %2454 = vadd.xlane.f32.xlu0 %v3415_v15  ;;  %v2311_v31 = vpop.xlane.xlu0 %2310  ;;  %v3417_v7 = vpop.eup %3416 }
 0x407   : > { %3426 = vpow2.f32 %v2394_v22  ;;  %v4534_v41 = vsub.f32 %v4405_v10, %v2311_v31  ;;  %v2313_v23 = vpop.xlane.xlu1 %2312 }
 0x408   : > { %v4537_v0 = vsub.f32 %v4409_v14, %v2313_v23  ;;  %3428 = vpow2.f32 %v2396_v12 }
 0x409   : > { %v3419_v16 = vpop.eup %3418  ;;  %v2406_v43 = vmul.f32 1.442695, %v4534_v41  ;;  %2456 = vadd.xlane.f32.xlu1 %v3417_v7 }
 0x40a   : > { %v2408_v57 = vmul.f32 1.442695, %v4537_v0  ;;  %2450 = vadd.xlane.f32.xlu0 %v3419_v16  ;;  %v2307_v33 = vpop.xlane.xlu0 %2306  ;;  %v3421_v42 = vpop.eup %3420 }
 0x40b   : > { %3430 = vpow2.f32 %v2406_v43  ;;  %v4542_v32 = vsub.f32 %v4414_v11, %v2307_v33  ;;  %v2309_v10 = vpop.xlane.xlu1 %2308 }
 0x40c   : > { %v4545_v49 = vsub.f32 %v4417_v51, %v2309_v10  ;;  %3432 = vpow2.f32 %v2408_v57 }
 0x40d   : > { %v3423_v14 = vpop.eup %3422  ;;  %v2402_v39 = vmul.f32 1.442695, %v4542_v32  ;;  %2452 = vadd.xlane.f32.xlu1 %v3421_v42 }
 0x40e   : > { %v2404_v53 = vmul.f32 1.442695, %v4545_v49  ;;  %2462 = vadd.xlane.f32.xlu0 %v3423_v14  ;;  %v2319_v26 = vpop.xlane.xlu0 %2318  ;;  %v3425_v19 = vpop.eup %3424 }
 0x40f   : > { %3434 = vpow2.f32 %v2402_v39  ;;  %v4550_v60 = vsub.f32 %v4421_v4, %v2319_v26  ;;  %v2321_v11 = vpop.xlane.xlu1 %2320 }
 0x410   : > { %v4553_v44 = vsub.f32 %v4425_v24, %v2321_v11  ;;  %3436 = vpow2.f32 %v2404_v53 }
 0x411   : > { %v3427_v51 = vpop.eup %3426  ;;  %v2414_v38 = vmul.f32 1.442695, %v4550_v60  ;;  %2464 = vadd.xlane.f32.xlu1 %v3425_v19 }
 0x412   : > { %v2416_v2 = vmul.f32 1.442695, %v4553_v44  ;;  %2458 = vadd.xlane.f32.xlu0 %v3427_v51  ;;  %v2315_v45 = vpop.xlane.xlu0 %2314  ;;  %v3429_v21 = vpop.eup %3428 }
 0x413   : > { %3438 = vpow2.f32 %v2414_v38  ;;  %v4558_v46 = vsub.f32 %v4430_v47, %v2315_v45  ;;  %v2317_v4 = vpop.xlane.xlu1 %2316 }
 0x414   : > { %v4561_v20 = vsub.f32 %v4433_v37, %v2317_v4  ;;  %3440 = vpow2.f32 %v2416_v2 }
 0x415   : > { %v3431_v24 = vpop.eup %3430  ;;  %v2410_v17 = vmul.f32 1.442695, %v4558_v46  ;;  %2460 = vadd.xlane.f32.xlu1 %v3429_v21 }
 0x416   : > { %v2412_v61 = vmul.f32 1.442695, %v4561_v20  ;;  %2470 = vadd.xlane.f32.xlu0 %v3431_v24  ;;  %v2327_v1 = vpop.xlane.xlu0 %2326  ;;  %v3433_v59 = vpop.eup %3432 }
 0x417   : > { %3442 = vpow2.f32 %v2410_v17  ;;  %v4566_v5 = vsub.f32 %v4437_v34, %v2327_v1  ;;  %v2329_v47 = vpop.xlane.xlu1 %2328 }
 0x418   : > { %v4569_v15 = vsub.f32 %v4441_v48, %v2329_v47  ;;  %3444 = vpow2.f32 %v2412_v61 }
 0x419   : > { %v3435_v37 = vpop.eup %3434  ;;  %v2422_v22 = vmul.f32 1.442695, %v4566_v5  ;;  %2472 = vadd.xlane.f32.xlu1 %v3433_v59 }
 0x41a   : > { %v2424_v12 = vmul.f32 1.442695, %v4569_v15  ;;  %2466 = vadd.xlane.f32.xlu0 %v3435_v37  ;;  %v2323_v31 = vpop.xlane.xlu0 %2322  ;;  %v3437_v7 = vpop.eup %3436 }
 0x41b   : > { %3446 = vpow2.f32 %v2422_v22  ;;  %v4574_v23 = vsub.f32 %v4446_v54, %v2323_v31  ;;  %v2325_v34 = vpop.xlane.xlu1 %2324 }
 0x41c   : > { %v4577_v16 = vsub.f32 %v4449_v56, %v2325_v34  ;;  %3448 = vpow2.f32 %v2424_v12 }
 0x41d   : > { %v3439_v48 = vpop.eup %3438  ;;  %v2418_v43 = vmul.f32 1.442695, %v4574_v23  ;;  %2468 = vadd.xlane.f32.xlu1 %v3437_v7 }
 0x41e   : > { %v2420_v57 = vmul.f32 1.442695, %v4577_v16  ;;  %2478 = vadd.xlane.f32.xlu0 %v3439_v48  ;;  %v3441_v33 = vpop.eup %3440 }
 0x41f   : > { %3450 = vpow2.f32 %v2418_v43 }
 0x420   : > { %3452 = vpow2.f32 %v2420_v57 }
 0x421   : > { %v3443_v10 = vpop.eup %3442  ;;  %2480 = vadd.xlane.f32.xlu1 %v3441_v33  ;;  %v2331_v42 = vpop.xlane.xlu0 %2330 }
 0x422   : > { %v4582_v54 = vsub.f32 %v4457_v28, %v2331_v42  ;;  %2474 = vadd.xlane.f32.xlu0 %v3443_v10  ;;  %v3445_v14 = vpop.eup %3444 }
 0x423   : > { %v2333_v56 = vpop.xlane.xlu1 %2332 }
 0x424   : > { %v2426_v39 = vmul.f32 1.442695, %v4582_v54  ;;  %v4586_v53 = vsub.f32 %v4463_v18, %v2333_v56 }
 0x425   : > { %v3447_v26 = vpop.eup %3446  ;;  %2476 = vadd.xlane.f32.xlu1 %v3445_v14  ;;  %v2335_v11 = vpop.xlane.xlu0 %2334 }
 0x426   : > { %3454 = vpow2.f32 %v2426_v39  ;;  %v2428_v19 = vmul.f32 1.442695, %v4586_v53  ;;  %v4590_v51 = vsub.f32 %v4454_v35, %v2335_v11  ;;  %2486 = vadd.xlane.f32.xlu0 %v3447_v26  ;;  %v3449_v38 = vpop.eup %3448 }
 0x427   : > { %v2337_v28 = vpop.xlane.xlu1 %2336 }
 0x428   : > { %3456 = vpow2.f32 %v2428_v19  ;;  %v2430_v2 = vmul.f32 1.442695, %v4590_v51  ;;  %v4594_v45 = vsub.f32 %v4460_v3, %v2337_v28 }
 0x429   : > { %v3451_v18 = vpop.eup %3450  ;;  %2488 = vadd.xlane.f32.xlu1 %v3449_v38 }
 0x42a   : > { %3458 = vpow2.f32 %v2430_v2  ;;  %v2432_v4 = vmul.f32 1.442695, %v4594_v45  ;;  %2482 = vadd.xlane.f32.xlu0 %v3451_v18  ;;  %v3453_v21 = vpop.eup %3452 }
 0x42c   : > { %3460 = vpow2.f32 %v2432_v4 }
 0x42d   : > { %2484 = vadd.xlane.f32.xlu1 %v3453_v21 }
 0x430   : > { %v3455_v35 = vpop.eup %3454 }
 0x431   : > { %2490 = vadd.xlane.f32.xlu0 %v3455_v35 }
 0x432   : > { %v3457_v24 = vpop.eup %3456 }
 0x433   : > { %2492 = vadd.xlane.f32.xlu1 %v3457_v24 }
 0x434   : > { %v3459_v17 = vpop.eup %3458 }
 0x435   : > { %2494 = vadd.xlane.f32.xlu0 %v3459_v17 }
 0x436   : > { %v3461_v61 = vpop.eup %3460 }
 0x437   : > { %2496 = vadd.xlane.f32.xlu1 %v3461_v61 }
 0x482   : > { %v2439_v3 = vpop.xlane.xlu0 %2438 }
 0x483   : > { %3462 = vlog2.f32 %v2439_v3 }
 0x486   : > { %v2441_v1 = vpop.xlane.xlu1 %2440  ;;  %v2435_v47 = vpop.xlane.xlu0 %2434 }
 0x487   : > { %3464 = vlog2.f32 %v2441_v1 }
 0x488   : > { %3466 = vlog2.f32 %v2435_v47 }
 0x48a   : > { %v2437_v59 = vpop.xlane.xlu1 %2436 }
 0x48b   : > { %3468 = vlog2.f32 %v2437_v59  ;;  %v2447_v37 = vpop.xlane.xlu0 %2446 }
 0x48c   : > { %3470 = vlog2.f32 %v2447_v37 }
 0x48d   : > { %v3463_v22 = vpop.eup %3462 }
 0x48e   : > { %v2503_v12 = vmul.f32 0.6931472, %v3463_v22  ;;  %v2449_v31 = vpop.xlane.xlu1 %2448 }
 0x48f   : > { %3472 = vlog2.f32 %v2449_v31  ;;  %v2443_v34 = vpop.xlane.xlu0 %2442 }
 0x490   : > { %v2564_v7 = vsub.f32 %v4470_v13, %v2503_v12  ;;  %3474 = vlog2.f32 %v2443_v34 }
 0x491   : > { %v3465_v48 = vpop.eup %3464 }
 0x492   : > { %v3467_v43 = vpop.eup %3466  ;;  %2596 = vst [vmem:[%s4601_s25 + $0x10] sm:$0xff] %v2564_v7  ;;  %v2505_v57 = vmul.f32 0.6931472, %v3465_v48  ;;  %v2445_v33 = vpop.xlane.xlu1 %2444 }
 0x493   : > { %v2499_v10 = vmul.f32 0.6931472, %v3467_v43  ;;  %3476 = vlog2.f32 %v2445_v33  ;;  %v2455_v42 = vpop.xlane.xlu0 %2454 }
 0x494   : > { %v2565_v56 = vsub.f32 %v4478_v58, %v2505_v57  ;;  %3478 = vlog2.f32 %v2455_v42 }
 0x495   : > { %v3469_v14 = vpop.eup %3468  ;;  %v2562_v39 = vsub.f32 %v4473_v50, %v2499_v10 }
 0x496   : > { %v3471_v26 = vpop.eup %3470  ;;  %2597 = vst [vmem:[%s4601_s25 + $0x18] sm:$0xff] %v2565_v56  ;;  %v2501_v13 = vmul.f32 0.6931472, %v3469_v14  ;;  %v2457_v11 = vpop.xlane.xlu1 %2456 }
 0x497   : > { %2594 = vst [vmem:[%s4601_s25] sm:$0xff] %v2562_v39  ;;  %v2511_v19 = vmul.f32 0.6931472, %v3471_v26  ;;  %3480 = vlog2.f32 %v2457_v11  ;;  %v2451_v28 = vpop.xlane.xlu0 %2450 }
 0x498   : > { %v2563_v38 = vsub.f32 %v4481_v52, %v2501_v13  ;;  %3482 = vlog2.f32 %v2451_v28 }
 0x499   : > { %v3473_v2 = vpop.eup %3472  ;;  %v2568_v58 = vsub.f32 %v4486_v25, %v2511_v19 }
 0x49a   : > { %v3475_v18 = vpop.eup %3474  ;;  %2595 = vst [vmem:[%s4601_s25 + $0x8] sm:$0xff] %v2563_v38  ;;  %v2513_v50 = vmul.f32 0.6931472, %v3473_v2  ;;  %v2453_v4 = vpop.xlane.xlu1 %2452 }
 0x49b   : > { %2600 = vst [vmem:[%s4601_s25 + $0x30] sm:$0xff] %v2568_v58  ;;  %v2507_v21 = vmul.f32 0.6931472, %v3475_v18  ;;  %3484 = vlog2.f32 %v2453_v4  ;;  %v2463_v35 = vpop.xlane.xlu0 %2462 }
 0x49c   : > { %v2569_v24 = vsub.f32 %v4489_v6, %v2513_v50  ;;  %3486 = vlog2.f32 %v2463_v35 }
 0x49d   : > { %v3477_v17 = vpop.eup %3476  ;;  %v2566_v52 = vsub.f32 %v4494_v9, %v2507_v21 }
 0x49e   : > { %v3479_v61 = vpop.eup %3478  ;;  %2601 = vst [vmem:[%s4601_s25 + $0x38] sm:$0xff] %v2569_v24  ;;  %v2509_v25 = vmul.f32 0.6931472, %v3477_v17  ;;  %v2465_v3 = vpop.xlane.xlu1 %2464 }
 0x49f   : > { %2598 = vst [vmem:[%s4601_s25 + $0x20] sm:$0xff] %v2566_v52  ;;  %v2519_v1 = vmul.f32 0.6931472, %v3479_v61  ;;  %3488 = vlog2.f32 %v2465_v3  ;;  %v2459_v47 = vpop.xlane.xlu0 %2458 }
 0x4a0   : > { %v2567_v59 = vsub.f32 %v4497_v30, %v2509_v25  ;;  %3490 = vlog2.f32 %v2459_v47 }
 0x4a1   : > { %v3481_v37 = vpop.eup %3480  ;;  %v2572_v6 = vsub.f32 %v4502_v29, %v2519_v1 }
 0x4a2   : > { %v3483_v22 = vpop.eup %3482  ;;  %2599 = vst [vmem:[%s4601_s25 + $0x28] sm:$0xff] %v2567_v59  ;;  %v2521_v9 = vmul.f32 0.6931472, %v3481_v37  ;;  %v2461_v12 = vpop.xlane.xlu1 %2460 }
 0x4a3   : > { %2604 = vst [vmem:[%s4601_s25 + $0x50] sm:$0xff] %v2572_v6  ;;  %v2515_v31 = vmul.f32 0.6931472, %v3483_v22  ;;  %3492 = vlog2.f32 %v2461_v12  ;;  %v2471_v34 = vpop.xlane.xlu0 %2470 }
 0x4a4   : > { %v2573_v7 = vsub.f32 %v4505_v36, %v2521_v9  ;;  %3494 = vlog2.f32 %v2471_v34 }
 0x4a5   : > { %v3485_v48 = vpop.eup %3484  ;;  %v2570_v30 = vsub.f32 %v4510_v63, %v2515_v31 }
 0x4a6   : > { %v3487_v43 = vpop.eup %3486  ;;  %2605 = vst [vmem:[%s4601_s25 + $0x58] sm:$0xff] %v2573_v7  ;;  %v2517_v29 = vmul.f32 0.6931472, %v3485_v48  ;;  %v2473_v57 = vpop.xlane.xlu1 %2472 }
 0x4a7   : > { %2602 = vst [vmem:[%s4601_s25 + $0x40] sm:$0xff] %v2570_v30  ;;  %v2527_v33 = vmul.f32 0.6931472, %v3487_v43  ;;  %3496 = vlog2.f32 %v2473_v57  ;;  %v2467_v10 = vpop.xlane.xlu0 %2466 }
 0x4a8   : > { %v2571_v42 = vsub.f32 %v4513_v55, %v2517_v29  ;;  %3498 = vlog2.f32 %v2467_v10 }
 0x4a9   : > { %v3489_v56 = vpop.eup %3488  ;;  %v2576_v36 = vsub.f32 %v4518_v62, %v2527_v33 }
 0x4aa   : > { %v3491_v14 = vpop.eup %3490  ;;  %2603 = vst [vmem:[%s4601_s25 + $0x48] sm:$0xff] %v2571_v42  ;;  %v2529_v63 = vmul.f32 0.6931472, %v3489_v56  ;;  %v2469_v39 = vpop.xlane.xlu1 %2468 }
 0x4ab   : > { %2608 = vst [vmem:[%s4601_s25 + $0x70] sm:$0xff] %v2576_v36  ;;  %v2523_v26 = vmul.f32 0.6931472, %v3491_v14  ;;  %3500 = vlog2.f32 %v2469_v39  ;;  %v2479_v13 = vpop.xlane.xlu0 %2478 }
 0x4ac   : > { %v2577_v11 = vsub.f32 %v4521_v27, %v2529_v63  ;;  %3502 = vlog2.f32 %v2479_v13 }
 0x4ad   : > { %v3493_v19 = vpop.eup %3492  ;;  %v2574_v55 = vsub.f32 %v4526_v40, %v2523_v26 }
 0x4ae   : > { %v3495_v28 = vpop.eup %3494  ;;  %2609 = vst [vmem:[%s4601_s25 + $0x78] sm:$0xff] %v2577_v11  ;;  %v2525_v62 = vmul.f32 0.6931472, %v3493_v19  ;;  %v2481_v38 = vpop.xlane.xlu1 %2480 }
 0x4af   : > { %2606 = vst [vmem:[%s4601_s25 + $0x60] sm:$0xff] %v2574_v55  ;;  %v2535_v2 = vmul.f32 0.6931472, %v3495_v28  ;;  %3504 = vlog2.f32 %v2481_v38  ;;  %v2475_v58 = vpop.xlane.xlu0 %2474 }
 0x4b0   : > { %v2575_v18 = vsub.f32 %v4529_v8, %v2525_v62  ;;  %3506 = vlog2.f32 %v2475_v58 }
 0x4b1   : > { %v3497_v50 = vpop.eup %3496  ;;  %v2580_v27 = vsub.f32 %v4534_v41, %v2535_v2 }
 0x4b2   : > { %v3499_v4 = vpop.eup %3498  ;;  %2607 = vst [vmem:[%s4601_s25 + $0x68] sm:$0xff] %v2575_v18  ;;  %v2537_v40 = vmul.f32 0.6931472, %v3497_v50  ;;  %v2477_v21 = vpop.xlane.xlu1 %2476 }
 0x4b3   : > { %2612 = vst [vmem:[%s4601_s25 + $0x90] sm:$0xff] %v2580_v27  ;;  %v2531_v35 = vmul.f32 0.6931472, %v3499_v4  ;;  %3508 = vlog2.f32 %v2477_v21  ;;  %v2487_v24 = vpop.xlane.xlu0 %2486 }
 0x4b4   : > { %v2581_v17 = vsub.f32 %v4537_v0, %v2537_v40  ;;  %3510 = vlog2.f32 %v2487_v24 }
 0x4b5   : > { %v3501_v52 = vpop.eup %3500  ;;  %v2578_v8 = vsub.f32 %v4542_v32, %v2531_v35 }
 0x4b6   : > { %v3503_v61 = vpop.eup %3502  ;;  %2613 = vst [vmem:[%s4601_s25 + $0x98] sm:$0xff] %v2581_v17  ;;  %v2533_v41 = vmul.f32 0.6931472, %v3501_v52  ;;  %v2489_v25 = vpop.xlane.xlu1 %2488 }
 0x4b7   : > { %2610 = vst [vmem:[%s4601_s25 + $0x80] sm:$0xff] %v2578_v8  ;;  %v2543_v3 = vmul.f32 0.6931472, %v3503_v61  ;;  %3512 = vlog2.f32 %v2489_v25  ;;  %v2483_v1 = vpop.xlane.xlu0 %2482 }
 0x4b8   : > { %v2579_v47 = vsub.f32 %v4545_v49, %v2533_v41  ;;  %3514 = vlog2.f32 %v2483_v1 }
 0x4b9   : > { %v3505_v59 = vpop.eup %3504  ;;  %v2584_v0 = vsub.f32 %v4550_v60, %v2543_v3 }
 0x4ba   : > { %v3507_v37 = vpop.eup %3506  ;;  %2611 = vst [vmem:[%s4601_s25 + $0x88] sm:$0xff] %v2579_v47  ;;  %v2545_v32 = vmul.f32 0.6931472, %v3505_v59  ;;  %v2485_v6 = vpop.xlane.xlu1 %2484 }
 0x4bb   : > { %2616 = vst [vmem:[%s4601_s25 + $0xb0] sm:$0xff] %v2584_v0  ;;  %v2539_v22 = vmul.f32 0.6931472, %v3507_v37  ;;  %3516 = vlog2.f32 %v2485_v6 }
 0x4bc   : > { %v2585_v9 = vsub.f32 %v4553_v44, %v2545_v32 }
 0x4bd   : > { %v3509_v12 = vpop.eup %3508  ;;  %v2582_v31 = vsub.f32 %v4558_v46, %v2539_v22 }
 0x4be   : > { %v3511_v34 = vpop.eup %3510  ;;  %2617 = vst [vmem:[%s4601_s25 + $0xb8] sm:$0xff] %v2585_v9  ;;  %v2541_v49 = vmul.f32 0.6931472, %v3509_v12  ;;  %v2491_v7 = vpop.xlane.xlu0 %2490 }
 0x4bf   : > { %2614 = vst [vmem:[%s4601_s25 + $0xa0] sm:$0xff] %v2582_v31  ;;  %v2551_v60 = vmul.f32 0.6931472, %v3511_v34  ;;  %3518 = vlog2.f32 %v2491_v7 }
 0x4c0   : > { %v2583_v48 = vsub.f32 %v4561_v20, %v2541_v49  ;;  %v2493_v30 = vpop.xlane.xlu1 %2492 }
 0x4c1   : > { %v3513_v43 = vpop.eup %3512  ;;  %v2588_v29 = vsub.f32 %v4566_v5, %v2551_v60  ;;  %3520 = vlog2.f32 %v2493_v30 }
 0x4c2   : > { %v3515_v44 = vpop.eup %3514  ;;  %2615 = vst [vmem:[%s4601_s25 + $0xa8] sm:$0xff] %v2583_v48  ;;  %v2553_v46 = vmul.f32 0.6931472, %v3513_v43  ;;  %v2495_v57 = vpop.xlane.xlu0 %2494 }
 0x4c3   : > { %2620 = vst [vmem:[%s4601_s25 + $0xd0] sm:$0xff] %v2588_v29  ;;  %v2547_v33 = vmul.f32 0.6931472, %v3515_v44  ;;  %3522 = vlog2.f32 %v2495_v57 }
 0x4c4   : > { %v2589_v10 = vsub.f32 %v4569_v15, %v2553_v46  ;;  %v2497_v42 = vpop.xlane.xlu1 %2496 }
 0x4c5   : > { %v3517_v20 = vpop.eup %3516  ;;  %v2586_v56 = vsub.f32 %v4574_v23, %v2547_v33  ;;  %3524 = vlog2.f32 %v2497_v42 }
 0x4c6   : > { %2621 = vst [vmem:[%s4601_s25 + $0xd8] sm:$0xff] %v2589_v10  ;;  %v2549_v5 = vmul.f32 0.6931472, %v3517_v20 }
 0x4c7   : > { %2618 = vst [vmem:[%s4601_s25 + $0xc0] sm:$0xff] %v2586_v56 }
 0x4c8   : > { %v2587_v36 = vsub.f32 %v4577_v16, %v2549_v5 }
 0x4c9   : > { %v3519_v14 = vpop.eup %3518 }
 0x4ca   : > { %2619 = vst [vmem:[%s4601_s25 + $0xc8] sm:$0xff] %v2587_v36  ;;  %v2555_v63 = vmul.f32 0.6931472, %v3519_v14 }
 0x4cb   : > { %v3521_v39 = vpop.eup %3520 }
 0x4cc   : > { %v2590_v15 = vsub.f32 %v4582_v54, %v2555_v63  ;;  %v2557_v26 = vmul.f32 0.6931472, %v3521_v39 }
 0x4cd   : > { %v3523_v13 = vpop.eup %3522 }
 0x4ce   : > { %2622 = vst [vmem:[%s4601_s25 + $0xe0] sm:$0xff] %v2590_v15  ;;  %v2591_v23 = vsub.f32 %v4586_v53, %v2557_v26  ;;  %v2559_v11 = vmul.f32 0.6931472, %v3523_v13 }
 0x4cf   : > { %v3525_v19 = vpop.eup %3524 }
 0x4d0   : > { %2623 = vst [vmem:[%s4601_s25 + $0xe8] sm:$0xff] %v2591_v23  ;;  %v2592_v55 = vsub.f32 %v4590_v51, %v2559_v11  ;;  %v2561_v28 = vmul.f32 0.6931472, %v3525_v19 }
 0x4d2   : > { %2624 = vst [vmem:[%s4601_s25 + $0xf0] sm:$0xff] %v2592_v55  ;;  %v2593_v16 = vsub.f32 %v4594_v45, %v2561_v28 }
 0x4d4   : > { %2625 = vst [vmem:[%s4601_s25 + $0xf8] sm:$0xff] %v2593_v16 }
 0x4d5 PF: > { %s17_s24 = sadd.s32 1, %s3532_s24  }
 0x4d6   : > { %p14_p4 = scmp.ge.s32.totalorder %s17_s24, 4  }
 0x4d8   :  { %16 = sbr.rel (!%p14_p4) target bundleno = 1 (0x1), region = 78 }

</bundles_post_ra>
